<compile_context>
chip_gen: v7x
topology: tpu7x:2x2x1
jax: 0.10.0
libtpu: 0.0.40
codegen_flags: <defaults>
</compile_context>

<pallas_src>
import functools

import jax
import jax.numpy as jnp
from jax import lax
from jax.experimental import pallas as pl
from jax.experimental.pallas import tpu as pltpu

_LANE = 128


def _bottleneck_kernel(x_top_ref, x_ctr_ref, x_bot_ref,
                       w1_ref, w2_ref, w3_ref,
                       b1_ref, b2_ref, b3_ref,
                       o_ref):
    TH = x_ctr_ref.shape[1]
    W = x_ctr_ref.shape[2]
    Cp = x_ctr_ref.shape[3]
    Cmp = w1_ref.shape[1]

    i = pl.program_id(1)
    is_first = i == 0
    is_last = i == pl.num_programs(1) - 1

    # (TH+2, W, Cp): top halo row, TH center rows, bottom halo row (all f32).
    x_rows = jnp.concatenate([x_top_ref[0], x_ctr_ref[0], x_bot_ref[0]], axis=0)

    # ---- conv1 (1x1, BN1 scale folded into w1) + bias + ReLU ----
    m1 = (TH + 2) * W
    h1 = jnp.dot(x_rows.reshape(m1, Cp).astype(jnp.bfloat16), w1_ref[...],
                 preferred_element_type=jnp.float32)
    h1 = jnp.maximum(h1 + b1_ref[...], 0.0)

    # Zero the halo rows that correspond to conv2's zero padding (must be applied
    # AFTER bias+ReLU: PyTorch pads conv2's input activations with exact zeros).
    ridx = lax.broadcasted_iota(jnp.int32, (m1, 1), 0)
    kill = (is_first & (ridx < W)) | (is_last & (ridx >= m1 - W))
    h1 = jnp.where(kill, 0.0, h1).astype(jnp.bfloat16).reshape(TH + 2, W, Cmp)

    # ---- conv2 (3x3, BN2 folded): kx shifts concatenated along K, loop over ky ----
    zcol = jnp.zeros((TH + 2, 1, Cmp), jnp.bfloat16)
    h1_l = jnp.concatenate([zcol, h1[:, :W - 1, :]], axis=1)   # input col w-1 (zero pad)
    h1_r = jnp.concatenate([h1[:, 1:, :], zcol], axis=1)       # input col w+1 (zero pad)
    h1cat = jnp.concatenate([h1_l, h1, h1_r], axis=-1)         # (TH+2, W, 3*Cmp) bf16

    m2 = TH * W
    acc = jnp.dot(h1cat[0:TH].reshape(m2, 3 * Cmp), w2_ref[0],
                  preferred_element_type=jnp.float32)
    acc = acc + jnp.dot(h1cat[1:TH + 1].reshape(m2, 3 * Cmp), w2_ref[1],
                        preferred_element_type=jnp.float32)
    acc = acc + jnp.dot(h1cat[2:TH + 2].reshape(m2, 3 * Cmp), w2_ref[2],
                        preferred_element_type=jnp.float32)
    h2 = jnp.maximum(acc + b2_ref[...], 0.0)

    # ---- conv3 (1x1, BN3 folded) + bias + residual + ReLU ----
    h3 = jnp.dot(h2.astype(jnp.bfloat16), w3_ref[...],
                 preferred_element_type=jnp.float32)
    res = x_ctr_ref[0].reshape(m2, Cp)                          # residual stays f32
    y = jnp.maximum(h3 + b3_ref[...] + res, 0.0)
    o_ref[0] = y.reshape(TH, W, Cp).astype(o_ref.dtype)


def _round_up(v, m):
    return (v + m - 1) // m * m


def _fold_bn(gamma, beta, mean, var, eps=1e-5):
    scale = gamma / jnp.sqrt(var + eps)
    shift = beta - mean * scale
    return scale.astype(jnp.float32), shift.astype(jnp.float32)


def _pad_row(v, n):
    return jnp.pad(v, (0, n - v.shape[0])).reshape(1, n)


def _choose_tile_rows(H, W, Cp, Cmp, budget_bytes=6 * 1024 * 1024):
    # Rough per-row working set: x/out/residual/h3 in f32 + conv1/conv2 f32
    # intermediates + h1cat bf16. Prefer the biggest divisor of H that fits.
    per_row = W * (16 * Cp + 8 * Cmp + 6 * Cmp)
    cap = max(1, budget_bytes // per_row)
    th = 1
    for d in range(1, H + 1):
        if H % d == 0 and d <= cap:
            th = d
    return th


@functools.partial(jax.jit, static_argnames=("tile_rows",))
def bottleneck_forward_nhwc(x, params, tile_rows=None):
    """x: (N, H, W, C) float32 NHWC. Returns (N, H, W, C) float32."""
    N, H, W, C = x.shape
    w1, bn1, w2, bn2, w3, bn3 = params
    Cm = w1.shape[1]
    Cp = _round_up(C, _LANE)
    Cmp = _round_up(Cm, _LANE)

    s1, b1 = _fold_bn(*bn1)
    s2, b2 = _fold_bn(*bn2)
    s3, b3 = _fold_bn(*bn3)

    # Fold BN scales into the conv weights (per-output-channel column scaling),
    # so the kernel only needs a bias-add after each matmul.
    w1f = w1.astype(jnp.float32) * s1[None, :]
    w2f = w2.astype(jnp.float32) * s2[None, None, None, :]
    w3f = w3.astype(jnp.float32) * s3[None, :]

    # Zero-pad channels to lane multiples (weights/biases are tiny; x only pads
    # when C itself is not already a multiple of 128).
    xp = x.astype(jnp.float32)
    if Cp != C:
        xp = jnp.pad(xp, ((0, 0), (0, 0), (0, 0), (0, Cp - C)))
    w1p = jnp.pad(w1f, ((0, Cp - C), (0, Cmp - Cm))).astype(jnp.bfloat16)
    w2p = jnp.pad(w2f, ((0, 0), (0, 0), (0, Cmp - Cm), (0, Cmp - Cm)))
    w2k = w2p.reshape(3, 3 * Cmp, Cmp).astype(jnp.bfloat16)     # kx folded into K
    w3p = jnp.pad(w3f, ((0, Cmp - Cm), (0, Cp - C))).astype(jnp.bfloat16)
    b1p = _pad_row(b1, Cmp)
    b2p = _pad_row(b2, Cmp)
    b3p = _pad_row(b3, Cp)

    TH = tile_rows if tile_rows is not None else _choose_tile_rows(H, W, Cp, Cmp)
    assert H % TH == 0, (H, TH)
    n_row_tiles = H // TH

    x_ctr = pl.BlockSpec((1, TH, W, Cp), lambda n, i: (n, i, 0, 0))
    x_top = pl.BlockSpec((1, 1, W, Cp),
                         lambda n, i: (n, jnp.maximum(i * TH - 1, 0), 0, 0))
    x_bot = pl.BlockSpec((1, 1, W, Cp),
                         lambda n, i: (n, jnp.minimum(i * TH + TH, H - 1), 0, 0))

    def full(shape):
        return pl.BlockSpec(shape, lambda n, i: (0,) * len(shape))

    flops = 2 * N * H * W * (Cp * Cmp + 9 * Cmp * Cmp + Cmp * Cp)
    bytes_accessed = (2 * N * H * W * Cp * 4
                      + 2 * (w1p.size + w2k.size + w3p.size))

    out = pl.pallas_call(
        _bottleneck_kernel,
        out_shape=jax.ShapeDtypeStruct((N, H, W, Cp), jnp.float32),
        grid_spec=pltpu.PrefetchScalarGridSpec(
            num_scalar_prefetch=0,
            grid=(N, n_row_tiles),
            in_specs=[x_top, x_ctr, x_bot,
                      full(w1p.shape), full(w2k.shape), full(w3p.shape),
                      full(b1p.shape), full(b2p.shape), full(b3p.shape)],
            out_specs=pl.BlockSpec((1, TH, W, Cp), lambda n, i: (n, i, 0, 0)),
        ),
        compiler_params=pltpu.CompilerParams(
            dimension_semantics=("parallel", "parallel"),
            vmem_limit_bytes=48 * 1024 * 1024),
        cost_estimate=pl.CostEstimate(flops=flops, transcendentals=0,
                                      bytes_accessed=bytes_accessed),
    )(xp, xp, xp, w1p, w2k, w3p, b1p, b2p, b3p)

    return out[..., :C]


def bottleneck_forward(x_nchw, params, tile_rows=None):
    """PyTorch-layout adapter: (N, C, H, W) -> (N, C, H, W).
    Transposes are layout plumbing only; prefer bottleneck_forward_nhwc to avoid
    the extra HBM round trips."""
    x = jnp.transpose(x_nchw, (0, 2, 3, 1))
    y = bottleneck_forward_nhwc(x, params, tile_rows=tile_rows)
    return jnp.transpose(y, (0, 3, 1, 2))


def bottleneck_reference_nhwc(x, params):
    """Pure-JAX f32 reference (NHWC) for correctness checking."""
    w1, bn1, w2, bn2, w3, bn3 = params
    s1, b1 = _fold_bn(*bn1)
    s2, b2 = _fold_bn(*bn2)
    s3, b3 = _fold_bn(*bn3)
    h = jnp.einsum('nhwc,cm->nhwm', x, w1)
    h = jnp.maximum(h * s1 + b1, 0.0)
    h = lax.conv_general_dilated(h, w2, window_strides=(1, 1), padding='SAME',
                                 dimension_numbers=('NHWC', 'HWIO', 'NHWC'))
    h = jnp.maximum(h * s2 + b2, 0.0)
    h = jnp.einsum('nhwm,mc->nhwc', h, w3)
    return jnp.maximum(h * s3 + b3 + x, 0.0)


def make_params(key, C, Cm):
    """Deterministic weights/BN stats for the bottleneck (HWIO conv weights)."""
    ks = jax.random.split(key, 6)
    w1 = jax.random.normal(ks[0], (C, Cm), jnp.float32) * 0.1          # 1x1 reduce
    w2 = jax.random.normal(ks[1], (3, 3, Cm, Cm), jnp.float32) * 0.1   # 3x3
    w3 = jax.random.normal(ks[2], (Cm, C), jnp.float32) * 0.1          # 1x1 expand

    def bn_stats(k, ch):
        k1, k2, k3, k4 = jax.random.split(k, 4)
        gamma = 1.0 + 0.1 * jax.random.normal(k1, (ch,), jnp.float32)
        beta = 0.1 * jax.random.normal(k2, (ch,), jnp.float32)
        mean = 0.1 * jax.random.normal(k3, (ch,), jnp.float32)
        var = 1.0 + jnp.abs(0.1 * jax.random.normal(k4, (ch,), jnp.float32))
        return (gamma, beta, mean, var)

    return (w1, bn_stats(ks[3], Cm), w2, bn_stats(ks[4], Cm), w3, bn_stats(ks[5], C))


if __name__ == "__main__":
    key = jax.random.PRNGKey(0)
    kx, kp = jax.random.split(key)

    N, C, H, W = 2, 128, 16, 16       # PyTorch NCHW input shape (small demo)
    Cm = C // 4                       # bottleneck width

    x = jax.random.normal(kx, (N, C, H, W), jnp.float32)
    params = make_params(kp, C, Cm)

    # tile_rows=8 -> grid (N=2, H/8=2): exercises the row-tile halo path.
    y = bottleneck_forward(x, params, tile_rows=8)
    jax.block_until_ready(y)

    assert y.shape == (N, C, H, W), y.shape
    assert y.dtype == jnp.float32

    # Cross-check against a pure-JAX f32 reference (loose tol: bf16 MXU math).
    x_nhwc = jnp.transpose(x, (0, 2, 3, 1))
    y_ref = jnp.transpose(bottleneck_reference_nhwc(x_nhwc, params), (0, 3, 1, 2))
    err = float(jnp.max(jnp.abs(y - y_ref)))
    assert err < 0.2, f"max abs err vs reference: {err}"

    print("KERNEL_OK")
</pallas_src>

<mosaic_0001>
module attributes {stable_mosaic.version = 11 : i64} {
  func.func @_bottleneck_kernel(%arg0: i32, %arg1: i32, %arg2: memref<1x1x16x128xf32, #tpu.memory_space<vmem>>, %arg3: memref<1x8x16x128xf32, #tpu.memory_space<vmem>>, %arg4: memref<1x1x16x128xf32, #tpu.memory_space<vmem>>, %arg5: memref<128x128xbf16, #tpu.memory_space<vmem>>, %arg6: memref<3x384x128xbf16, #tpu.memory_space<vmem>>, %arg7: memref<128x128xbf16, #tpu.memory_space<vmem>>, %arg8: memref<1x128xf32, #tpu.memory_space<vmem>>, %arg9: memref<1x128xf32, #tpu.memory_space<vmem>>, %arg10: memref<1x128xf32, #tpu.memory_space<vmem>>, %arg11: memref<1x8x16x128xf32, #tpu.memory_space<vmem>>) attributes {dimension_semantics = [#tpu.dimension_semantics<parallel>, #tpu.dimension_semantics<parallel>], iteration_bounds = array<i64: 2, 2>, scalar_prefetch = 0 : i64, scratch_operands = 0 : i64, tpu.core_type = #tpu.core_type<tc>, window_params = [{transform_indices = @transform_0, window_bounds = array<i64: 1, 1, 16, 128>}, {transform_indices = @transform_1, window_bounds = array<i64: 1, 8, 16, 128>}, {transform_indices = @transform_2, window_bounds = array<i64: 1, 1, 16, 128>}, {pipeline_mode = #tpu.pipeline_mode<synchronous>, transform_indices = @transform_3, window_bounds = array<i64: 128, 128>}, {pipeline_mode = #tpu.pipeline_mode<synchronous>, transform_indices = @transform_4, window_bounds = array<i64: 3, 384, 128>}, {pipeline_mode = #tpu.pipeline_mode<synchronous>, transform_indices = @transform_5, window_bounds = array<i64: 128, 128>}, {pipeline_mode = #tpu.pipeline_mode<synchronous>, transform_indices = @transform_6, window_bounds = array<i64: 1, 128>}, {pipeline_mode = #tpu.pipeline_mode<synchronous>, transform_indices = @transform_7, window_bounds = array<i64: 1, 128>}, {pipeline_mode = #tpu.pipeline_mode<synchronous>, transform_indices = @transform_8, window_bounds = array<i64: 1, 128>}, {transform_indices = @transform_9, window_bounds = array<i64: 1, 8, 16, 128>}]} {
    %c0_i32 = arith.constant 0 : i32
    %0 = arith.cmpi eq, %arg1, %c0_i32 : i32
    %c1_i32 = arith.constant 1 : i32
    %1 = arith.cmpi eq, %arg1, %c1_i32 : i32
    %c0 = arith.constant 0 : index
    %c0_0 = arith.constant 0 : index
    %c0_1 = arith.constant 0 : index
    %c0_2 = arith.constant 0 : index
    %2 = vector.load %arg2[%c0, %c0_0, %c0_1, %c0_2] : memref<1x1x16x128xf32, #tpu.memory_space<vmem>>, vector<1x1x16x128xf32>
    %3 = vector.shape_cast %2 : vector<1x1x16x128xf32> to vector<1x16x128xf32>
    %c0_3 = arith.constant 0 : index
    %c0_4 = arith.constant 0 : index
    %c0_5 = arith.constant 0 : index
    %c0_6 = arith.constant 0 : index
    %4 = vector.load %arg3[%c0_3, %c0_4, %c0_5, %c0_6] : memref<1x8x16x128xf32, #tpu.memory_space<vmem>>, vector<1x8x16x128xf32>
    %5 = vector.shape_cast %4 : vector<1x8x16x128xf32> to vector<8x16x128xf32>
    %c0_7 = arith.constant 0 : index
    %c0_8 = arith.constant 0 : index
    %c0_9 = arith.constant 0 : index
    %c0_10 = arith.constant 0 : index
    %6 = vector.load %arg4[%c0_7, %c0_8, %c0_9, %c0_10] : memref<1x1x16x128xf32, #tpu.memory_space<vmem>>, vector<1x1x16x128xf32>
    %7 = vector.shape_cast %6 : vector<1x1x16x128xf32> to vector<1x16x128xf32>
    %8 = tpu.concatenate %3, %5, %7 in 0 : vector<1x16x128xf32>, vector<8x16x128xf32>, vector<1x16x128xf32> -> vector<10x16x128xf32>
    %9 = vector.shape_cast %8 : vector<10x16x128xf32> to vector<160x128xf32>
    %10 = arith.truncf %9 : vector<160x128xf32> to vector<160x128xbf16>
    %c0_11 = arith.constant 0 : index
    %c0_12 = arith.constant 0 : index
    %11 = vector.load %arg5[%c0_11, %c0_12] : memref<128x128xbf16, #tpu.memory_space<vmem>>, vector<128x128xbf16>
    %cst = arith.constant dense<0.000000e+00> : vector<160x128xf32>
    %12 = tpu.matmul %10, %11, %cst {dimension_numbers = #tpu.dot_dimension_numbers<[1], [0], [0], [1], [0, 0, 1, 1], [], []>} : vector<160x128xbf16>, vector<128x128xbf16>, vector<160x128xf32> -> vector<160x128xf32>
    %c0_13 = arith.constant 0 : index
    %c0_14 = arith.constant 0 : index
    %13 = vector.load %arg8[%c0_13, %c0_14] : memref<1x128xf32, #tpu.memory_space<vmem>>, vector<1x128xf32>
    %14 = vector.broadcast %13 : vector<1x128xf32> to vector<160x128xf32>
    %15 = arith.addf %12, %14 : vector<160x128xf32>
    %cst_15 = arith.constant 0.000000e+00 : f32
    %16 = vector.broadcast %cst_15 : f32 to vector<160x128xf32>
    %17 = arith.maximumf %15, %16 : vector<160x128xf32>
    %18 = tpu.iota {dimensions = array<i32: 0>} : vector<160x1xi32>
    %c16_i32 = arith.constant 16 : i32
    %19 = vector.broadcast %c16_i32 : i32 to vector<160x1xi32>
    %20 = arith.cmpi slt, %18, %19 : vector<160x1xi32>
    %21 = vector.broadcast %0 : i1 to vector<160x1xi1>
    %22 = arith.andi %21, %20 : vector<160x1xi1>
    %c144_i32 = arith.constant 144 : i32
    %23 = vector.broadcast %c144_i32 : i32 to vector<160x1xi32>
    %24 = arith.cmpi sge, %18, %23 : vector<160x1xi32>
    %25 = vector.broadcast %1 : i1 to vector<160x1xi1>
    %26 = arith.andi %25, %24 : vector<160x1xi1>
    %27 = arith.ori %22, %26 : vector<160x1xi1>
    %cst_16 = arith.constant 0.000000e+00 : f32
    %28 = vector.shape_cast %27 : vector<160x1xi1> to vector<160x1xi1>
    %29 = vector.broadcast %28 : vector<160x1xi1> to vector<160x128xi1>
    %30 = vector.broadcast %cst_16 : f32 to vector<160x128xf32>
    %31 = arith.select %29, %30, %17 : vector<160x128xi1>, vector<160x128xf32>
    %32 = arith.truncf %31 : vector<160x128xf32> to vector<160x128xbf16>
    %33 = vector.shape_cast %32 : vector<160x128xbf16> to vector<10x16x128xbf16>
    %cst_17 = arith.constant 0.000000e+00 : bf16
    %34 = vector.broadcast %cst_17 : bf16 to vector<10x1x128xbf16>
    %35 = vector.extract_strided_slice %33 {offsets = [0, 0, 0], sizes = [10, 15, 128], strides = [1, 1, 1]} : vector<10x16x128xbf16> to vector<10x15x128xbf16>
    %36 = tpu.concatenate %34, %35 in 1 : vector<10x1x128xbf16>, vector<10x15x128xbf16> -> vector<10x16x128xbf16>
    %37 = vector.extract_strided_slice %33 {offsets = [0, 1, 0], sizes = [10, 15, 128], strides = [1, 1, 1]} : vector<10x16x128xbf16> to vector<10x15x128xbf16>
    %38 = tpu.concatenate %37, %34 in 1 : vector<10x15x128xbf16>, vector<10x1x128xbf16> -> vector<10x16x128xbf16>
    %39 = tpu.concatenate %36, %33, %38 in 2 : vector<10x16x128xbf16>, vector<10x16x128xbf16>, vector<10x16x128xbf16> -> vector<10x16x384xbf16>
    %40 = vector.extract_strided_slice %39 {offsets = [0, 0, 0], sizes = [8, 16, 384], strides = [1, 1, 1]} : vector<10x16x384xbf16> to vector<8x16x384xbf16>
    %41 = vector.shape_cast %40 : vector<8x16x384xbf16> to vector<128x384xbf16>
    %c0_18 = arith.constant 0 : index
    %c0_19 = arith.constant 0 : index
    %c0_20 = arith.constant 0 : index
    %42 = vector.load %arg6[%c0_18, %c0_19, %c0_20] : memref<3x384x128xbf16, #tpu.memory_space<vmem>>, vector<1x384x128xbf16>
    %43 = vector.shape_cast %42 : vector<1x384x128xbf16> to vector<384x128xbf16>
    %cst_21 = arith.constant dense<0.000000e+00> : vector<128x128xf32>
    %44 = tpu.matmul %41, %43, %cst_21 {dimension_numbers = #tpu.dot_dimension_numbers<[1], [0], [0], [1], [0, 0, 1, 1], [], []>} : vector<128x384xbf16>, vector<384x128xbf16>, vector<128x128xf32> -> vector<128x128xf32>
    %45 = vector.extract_strided_slice %39 {offsets = [1, 0, 0], sizes = [8, 16, 384], strides = [1, 1, 1]} : vector<10x16x384xbf16> to vector<8x16x384xbf16>
    %46 = vector.shape_cast %45 : vector<8x16x384xbf16> to vector<128x384xbf16>
    %c1 = arith.constant 1 : index
    %c0_22 = arith.constant 0 : index
    %c0_23 = arith.constant 0 : index
    %47 = vector.load %arg6[%c1, %c0_22, %c0_23] : memref<3x384x128xbf16, #tpu.memory_space<vmem>>, vector<1x384x128xbf16>
    %48 = vector.shape_cast %47 : vector<1x384x128xbf16> to vector<384x128xbf16>
    %cst_24 = arith.constant dense<0.000000e+00> : vector<128x128xf32>
    %49 = tpu.matmul %46, %48, %cst_24 {dimension_numbers = #tpu.dot_dimension_numbers<[1], [0], [0], [1], [0, 0, 1, 1], [], []>} : vector<128x384xbf16>, vector<384x128xbf16>, vector<128x128xf32> -> vector<128x128xf32>
    %50 = arith.addf %44, %49 : vector<128x128xf32>
    %51 = vector.extract_strided_slice %39 {offsets = [2, 0, 0], sizes = [8, 16, 384], strides = [1, 1, 1]} : vector<10x16x384xbf16> to vector<8x16x384xbf16>
    %52 = vector.shape_cast %51 : vector<8x16x384xbf16> to vector<128x384xbf16>
    %c2 = arith.constant 2 : index
    %c0_25 = arith.constant 0 : index
    %c0_26 = arith.constant 0 : index
    %53 = vector.load %arg6[%c2, %c0_25, %c0_26] : memref<3x384x128xbf16, #tpu.memory_space<vmem>>, vector<1x384x128xbf16>
    %54 = vector.shape_cast %53 : vector<1x384x128xbf16> to vector<384x128xbf16>
    %cst_27 = arith.constant dense<0.000000e+00> : vector<128x128xf32>
    %55 = tpu.matmul %52, %54, %cst_27 {dimension_numbers = #tpu.dot_dimension_numbers<[1], [0], [0], [1], [0, 0, 1, 1], [], []>} : vector<128x384xbf16>, vector<384x128xbf16>, vector<128x128xf32> -> vector<128x128xf32>
    %56 = arith.addf %50, %55 : vector<128x128xf32>
    %c0_28 = arith.constant 0 : index
    %c0_29 = arith.constant 0 : index
    %57 = vector.load %arg9[%c0_28, %c0_29] : memref<1x128xf32, #tpu.memory_space<vmem>>, vector<1x128xf32>
    %58 = vector.broadcast %57 : vector<1x128xf32> to vector<128x128xf32>
    %59 = arith.addf %56, %58 : vector<128x128xf32>
    %cst_30 = arith.constant 0.000000e+00 : f32
    %60 = vector.broadcast %cst_30 : f32 to vector<128x128xf32>
    %61 = arith.maximumf %59, %60 : vector<128x128xf32>
    %62 = arith.truncf %61 : vector<128x128xf32> to vector<128x128xbf16>
    %c0_31 = arith.constant 0 : index
    %c0_32 = arith.constant 0 : index
    %63 = vector.load %arg7[%c0_31, %c0_32] : memref<128x128xbf16, #tpu.memory_space<vmem>>, vector<128x128xbf16>
    %cst_33 = arith.constant dense<0.000000e+00> : vector<128x128xf32>
    %64 = tpu.matmul %62, %63, %cst_33 {dimension_numbers = #tpu.dot_dimension_numbers<[1], [0], [0], [1], [0, 0, 1, 1], [], []>} : vector<128x128xbf16>, vector<128x128xbf16>, vector<128x128xf32> -> vector<128x128xf32>
    %c0_34 = arith.constant 0 : index
    %c0_35 = arith.constant 0 : index
    %c0_36 = arith.constant 0 : index
    %c0_37 = arith.constant 0 : index
    %65 = vector.load %arg3[%c0_34, %c0_35, %c0_36, %c0_37] : memref<1x8x16x128xf32, #tpu.memory_space<vmem>>, vector<1x8x16x128xf32>
    %66 = vector.shape_cast %65 : vector<1x8x16x128xf32> to vector<8x16x128xf32>
    %67 = vector.shape_cast %66 : vector<8x16x128xf32> to vector<128x128xf32>
    %c0_38 = arith.constant 0 : index
    %c0_39 = arith.constant 0 : index
    %68 = vector.load %arg10[%c0_38, %c0_39] : memref<1x128xf32, #tpu.memory_space<vmem>>, vector<1x128xf32>
    %69 = vector.broadcast %68 : vector<1x128xf32> to vector<128x128xf32>
    %70 = arith.addf %64, %69 : vector<128x128xf32>
    %71 = arith.addf %70, %67 : vector<128x128xf32>
    %cst_40 = arith.constant 0.000000e+00 : f32
    %72 = vector.broadcast %cst_40 : f32 to vector<128x128xf32>
    %73 = arith.maximumf %71, %72 : vector<128x128xf32>
    %74 = vector.shape_cast %73 : vector<128x128xf32> to vector<8x16x128xf32>
    %c0_41 = arith.constant 0 : index
    %c0_42 = arith.constant 0 : index
    %c0_43 = arith.constant 0 : index
    %c0_44 = arith.constant 0 : index
    %75 = vector.load %arg11[%c0_41, %c0_42, %c0_43, %c0_44] : memref<1x8x16x128xf32, #tpu.memory_space<vmem>>, vector<1x8x16x128xf32>
    %76 = vector.shape_cast %75 : vector<1x8x16x128xf32> to vector<8x16x128xf32>
    %77 = vector.shape_cast %74 : vector<8x16x128xf32> to vector<1x8x16x128xf32>
    tpu.vector_store %arg11[%c0_41, %c0_42, %c0_43, %c0_44], %77 {strides = array<i32>} : memref<1x8x16x128xf32, #tpu.memory_space<vmem>>, vector<1x8x16x128xf32>,
    return
  }
  func.func @transform_0(%arg0: i32, %arg1: i32) -> (i32, i32, i32, i32) {
    %c8_i32 = arith.constant 8 : i32
    %0 = arith.muli %arg1, %c8_i32 : i32
    %c1_i32 = arith.constant 1 : i32
    %1 = arith.subi %0, %c1_i32 : i32
    %c0_i32 = arith.constant 0 : i32
    %2 = arith.maxsi %1, %c0_i32 : i32
    %c0_i32_0 = arith.constant 0 : i32
    %c0_i32_1 = arith.constant 0 : i32
    %c0_i32_2 = arith.constant 0 : i32
    return %arg0, %2, %c0_i32_0, %c0_i32_1 : i32, i32, i32, i32
  }
  func.func @transform_1(%arg0: i32, %arg1: i32) -> (i32, i32, i32, i32) {
    %c0_i32 = arith.constant 0 : i32
    %c0_i32_0 = arith.constant 0 : i32
    %c0_i32_1 = arith.constant 0 : i32
    return %arg0, %arg1, %c0_i32, %c0_i32_0 : i32, i32, i32, i32
  }
  func.func @transform_2(%arg0: i32, %arg1: i32) -> (i32, i32, i32, i32) {
    %c8_i32 = arith.constant 8 : i32
    %0 = arith.muli %arg1, %c8_i32 : i32
    %c8_i32_0 = arith.constant 8 : i32
    %1 = arith.addi %0, %c8_i32_0 : i32
    %c15_i32 = arith.constant 15 : i32
    %2 = arith.minsi %1, %c15_i32 : i32
    %c0_i32 = arith.constant 0 : i32
    %c0_i32_1 = arith.constant 0 : i32
    %c0_i32_2 = arith.constant 0 : i32
    return %arg0, %2, %c0_i32, %c0_i32_1 : i32, i32, i32, i32
  }
  func.func @transform_3(%arg0: i32, %arg1: i32) -> (i32, i32) {
    %c0_i32 = arith.constant 0 : i32
    %c0_i32_0 = arith.constant 0 : i32
    %c0_i32_1 = arith.constant 0 : i32
    return %c0_i32, %c0_i32_0 : i32, i32
  }
  func.func @transform_4(%arg0: i32, %arg1: i32) -> (i32, i32, i32) {
    %c0_i32 = arith.constant 0 : i32
    %c0_i32_0 = arith.constant 0 : i32
    %c0_i32_1 = arith.constant 0 : i32
    %c0_i32_2 = arith.constant 0 : i32
    return %c0_i32, %c0_i32_0, %c0_i32_1 : i32, i32, i32
  }
  func.func @transform_5(%arg0: i32, %arg1: i32) -> (i32, i32) {
    %c0_i32 = arith.constant 0 : i32
    %c0_i32_0 = arith.constant 0 : i32
    %c0_i32_1 = arith.constant 0 : i32
    return %c0_i32, %c0_i32_0 : i32, i32
  }
  func.func @transform_6(%arg0: i32, %arg1: i32) -> (i32, i32) {
    %c0_i32 = arith.constant 0 : i32
    %c0_i32_0 = arith.constant 0 : i32
    %c0_i32_1 = arith.constant 0 : i32
    return %c0_i32, %c0_i32_0 : i32, i32
  }
  func.func @transform_7(%arg0: i32, %arg1: i32) -> (i32, i32) {
    %c0_i32 = arith.constant 0 : i32
    %c0_i32_0 = arith.constant 0 : i32
    %c0_i32_1 = arith.constant 0 : i32
    return %c0_i32, %c0_i32_0 : i32, i32
  }
  func.func @transform_8(%arg0: i32, %arg1: i32) -> (i32, i32) {
    %c0_i32 = arith.constant 0 : i32
    %c0_i32_0 = arith.constant 0 : i32
    %c0_i32_1 = arith.constant 0 : i32
    return %c0_i32, %c0_i32_0 : i32, i32
  }
  func.func @transform_9(%arg0: i32, %arg1: i32) -> (i32, i32, i32, i32) {
    %c0_i32 = arith.constant 0 : i32
    %c0_i32_0 = arith.constant 0 : i32
    %c0_i32_1 = arith.constant 0 : i32
    return %arg0, %arg1, %c0_i32, %c0_i32_0 : i32, i32, i32, i32
  }
}

</mosaic_0001>

<bundles_post_ra>
// kernel: bottleneck_forward_nhwc.1
= control target key start
LH: loop header
LB: loop body
LE: loop exit
PB: predicated region body
PF: predicated region fallthrough
CT: control target
= control target key end

     0   :  { %s4640_s0 = inlined_call_operand.vmem [shape: f32[2,16,16,128], index: 0, kind: input, shape index: {}, may-alias: {0,1,2}]   ;;  %s4641_s1 = inlined_call_operand.vmem [shape: f32[2,16,16,128], index: 1, kind: input, shape index: {}, may-alias: {0,1,2}]   ;;  %s4642_s2 = inlined_call_operand.vmem [shape: f32[2,16,16,128], index: 2, kind: input, shape index: {}, may-alias: {0,1,2}]   ;;  %s4643_s3 = inlined_call_operand.vmem [shape: bf16[128,128], index: 3, kind: input, shape index: {}]   ;;  %s4644_s4 = inlined_call_operand.vmem [shape: bf16[3,384,128], index: 4, kind: input, shape index: {}]   ;;  %s4645_s5 = inlined_call_operand.vmem [shape: bf16[128,128], index: 5, kind: input, shape index: {}]   ;;  %s4646_s6 = inlined_call_operand.vmem [shape: f32[1,128], index: 6, kind: input, shape index: {}]   ;;  %s4647_s7 = inlined_call_operand.vmem [shape: f32[1,128], index: 7, kind: input, shape index: {}]   ;;  %s4648_s8 = inlined_call_operand.vmem [shape: f32[1,128], index: 8, kind: input, shape index: {}]   ;;  %s4649_s9 = inlined_call_operand.hbm [shape: f32[2,16,16,128], index: 9, kind: output, shape index: {}]  }
   0x1   :  { %4654 = sst [smem:[#allocation9_spill]] %s4640_s0 }
   0x2   :  { %14 = vsyncpa [#allocation3], 0 }
   0x3   :  { %16 = vsyncpa [#allocation3 + $0x1], 0  ;;  %s3742_s30 = smov 0   ;;  %s3744_s10 = smov 0  }
   0x4   :  { %s3746_s11 = smov 0   ;;  %s3748_s12 = smov 0  }
   0x5   :  { %s3750_s13 = smov 0   ;;  %s3752_s14 = smov 0  }
   0x6   :  { %s3754_s15 = smov 0   ;;  %s3756_s16 = smov 0  }
   0x7 LB: > { %4655 = sst [smem:[#allocation5_spill]] %s3679_s14  ;;  %s2642_s17 = sadd.s32 4294967295, %s3687_s16   ;;  %s3687_s16 = sphi %s3756_s16, %s22_s16   ;;  %s3683_s15 = sphi %s3754_s15, %s4674_s15   ;;  %s3679_s14 = sphi %s3752_s14, %s4673_s14   ;;  %s3675_s13 = sphi %s3750_s13, %s4672_s13   ;;  %s3671_s12 = sphi %s3748_s12, %s4671_s12   ;;  %s3667_s11 = sphi %s3746_s11, %s4677_s11   ;;  %s3663_s10 = sphi %s3744_s10, %s4676_s10   ;;  %s3659_s30 = sphi %s3742_s30, %s4675_s30  }
   0x8   : > { %4656 = sst [smem:[#allocation6_spill]] %s3683_s15  ;;  %s2643_s18 = sadd.s32 4294967294, %s3687_s16  }
   0x9   : > { %s31_s19 = sadd.s32 1, %s3679_s14  ;;  %s34_s20 = sadd.s32 1, %s3683_s15 }
   0xa   : > { %p32_p0 = scmp.ge.s32.totalorder %s31_s19, 2  ;;  %p279_p1 = scmp.ne.s32.totalorder %s3667_s11, %s3663_s10 }
   0xb   : > { %p280_p2 = scmp.eq.s32.totalorder %s2642_s17, 3  ;;  %p285_p5 = scmp.ne.s32.totalorder %s3663_s10, %s3659_s30 }
   0xc   : > { %s4679_s19 = smov (%p32_p0, %s31_s19), 0  ;;  %s4681_s20 = smov (!%p32_p0, %s34_s20), %s3683_s15 }
   0xd   : > { %4657 = sst [smem:[#allocation7_spill]] %s4679_s19  ;;  %s265_s21 = ssub.s32 %s3679_s14, %s4679_s19 }
   0xe   : > { %p3793_p3 = por %p280_p2, %p279_p1  ;;  %p36_p4 = scmp.ge.s32.totalorder %s4681_s20, 2 }
   0xf   : > { %p286_p6 = scmp.eq.s32.totalorder %s2643_s18, 3  ;;  %p2652_p7 = scmp.ge.s32.totalorder %s3687_s16, 1 }
  0x10   : > { %s4683_s20 = smov (%p36_p4, %s4681_s20), 0  ;;  %p376_p9 = scmp.lt.s32.totalorder %s3687_s16, 5 }
  0x11   : > { %4659 = sst [smem:[#allocation8_spill]] %s4683_s20  ;;  %p3802_p8 = por %p286_p6, %p285_p5 }
  0x12   : > { %s264_s24 = ssub.s32 %s3683_s15, %s4683_s20  ;;  %s269_s25 = sadd.s32 1, %s3667_s11 }
  0x13   : > { %s266_s26 = sor.u32 %s265_s21, %s264_s24  ;;  %p377_p10 = pnand %p2652_p7, %p376_p9 }
  0x14   : > { %p267_p11 = scmp.eq.s32.totalorder %s266_s26, 0  ;;  %v3489_v0 = vld [vmem:[%s4643_s3] sm:$0xff] (!%p377_p10)   ;;  %s3817_s17 = sshll.u32 (!%p377_p10), %s3671_s12, 3  ;;  %v3490_v1 = vld [vmem:[%s4643_s3 + $0x8] sm:$0xff] (!%p377_p10)   ;;  %v3491_v2 = vld [vmem:[%s4643_s3 + $0x10] sm:$0xff] (!%p377_p10)   ;;  %vm1003_vm2 = vcmask (!%p377_p10), 1040384  }
  0x15   : > { %380 = sbr.rel (%p377_p10) target bundleno = 902 (0x386), region = 56  ;;  %s2655_s21 = sadd.s32 (!%p377_p10), 4294967295, %s3817_s17  ;;  %3156 = vmatprep.subr.bf16.mxu0 (!%p377_p10), %v3489_v0  ;;  %3320 = vmatprep.subr.bf16.mxu1 (!%p377_p10), %v3489_v0  ;;  %v3492_v3 = vld [vmem:[%s4643_s3 + $0x18] sm:$0xff] (!%p377_p10)   ;;  %v3493_v4 = vld [vmem:[%s4643_s3 + $0x20] sm:$0xff] (!%p377_p10)   ;;  %v3494_v8 = vld [vmem:[%s4643_s3 + $0x28] sm:$0xff] (!%p377_p10)   ;;  %vm1046_vm4 = vcmask (!%p377_p10), 1047552  }
  0x16   : > { %s3811_s27 = scalar_select %p267_p11, %s3667_s11, %s269_s25  }
  0x17   : > { %p445_p12 = scmp.gt.s32.totalorder (!%p377_p10), %s2655_s21, 0  ;;  %3157 = vmatpush3.bf16.msra.mxu0 (!%p377_p10), %v3489_v0  ;;  %3328 = vmatpush3.bf16.msra.mxu1 (!%p377_p10), %v3489_v0  ;;  %p447_p13 = scmp.lt.s32.totalorder (!%p377_p10), %s3675_s13, 1  ;;  %v3495_v9 = vld [vmem:[%s4643_s3 + $0x30] sm:$0xff] (!%p377_p10)   ;;  %v3496_v10 = vld [vmem:[%s4643_s3 + $0x38] sm:$0xff] (!%p377_p10)   ;;  %v3497_v20 = vld [vmem:[%s4644_s4 + $0x100] sm:$0xff] (!%p377_p10)  }
  0x18   : > { %3158 = vmatprep.subr.bf16.mxu0 (!%p377_p10), %v3490_v1  ;;  %3321 = vmatprep.subr.bf16.mxu1 (!%p377_p10), %v3490_v1  ;;  %p2656_p0 = scmp.lt.s32.totalorder (!%p377_p10), %s2655_s21, 15  ;;  %p463_p1 = scmp.lt.s32.totalorder (!%p377_p10), %s3817_s17, 15  ;;  %v3502_v21 = vld [vmem:[%s4644_s4 + $0x140] sm:$0xff] (!%p377_p10)   ;;  %v3499_v25 = vld [vmem:[%s4644_s4 + $0x108] sm:$0xff] (!%p377_p10)   ;;  %v3501_v33 = vld [vmem:[%s4644_s4 + $0x110] sm:$0xff] (!%p377_p10)  }
  0x19   : > { %s472_s24 = sadd.s32 (!%p377_p10), 8, %s3817_s17  ;;  %s4662_s0 = sld [smem:[#allocation9_spill]] (!%p377_p10)  ;;  %v3498_v22 = vld [vmem:[%s4644_s4 + $0xc0] sm:$0xff] (!%p377_p10)   ;;  %v3505_v27 = vld [vmem:[%s4644_s4 + $0x148] sm:$0xff] (!%p377_p10)   ;;  %v3503_v34 = vld [vmem:[%s4644_s4 + $0xd0] sm:$0xff] (!%p377_p10)  }
  0x1a   : > { %p3835_p2 = scmp.lt.s32.totalorder (!%p377_p10), %s472_s24, 15  ;;  %v3500_v30 = vld [vmem:[%s4644_s4 + $0xc8] sm:$0xff] (!%p377_p10)   ;;  %v3504_v36 = vld [vmem:[%s4644_s4 + $0x118] sm:$0xff] (!%p377_p10)   ;;  %v3507_v48 = vld [vmem:[%s4644_s4 + $0x120] sm:$0xff] (!%p377_p10)   ;;  %p491_p4 = scmp.eq.s32.totalorder (!%p377_p10), %s3671_s12, 1 }
  0x1b   : > { %3159 = vmatpush3.bf16.msra.mxu0 (!%p377_p10), %v3490_v1  ;;  %3329 = vmatpush3.bf16.msra.mxu1 (!%p377_p10), %v3490_v1  ;;  %v3506_v40 = vld [vmem:[%s4644_s4 + $0xd8] sm:$0xff] (!%p377_p10)   ;;  %v3508_v49 = vld [vmem:[%s4644_s4 + $0x150] sm:$0xff] (!%p377_p10)   ;;  %v3509_v50 = vld [vmem:[%s4644_s4 + $0xe0] sm:$0xff] (!%p377_p10)   ;;  %p490_p5 = scmp.eq.s32.totalorder (!%p377_p10), %s3671_s12, 0  ;;  %vm1004_vm3 = vsmask.f32 (!%p377_p10), 256 }
  0x1c   : > { %s446_s26 = scalar_select %p445_p12, %s2655_s21, 0  ;;  %3160 = vmatprep.subr.bf16.mxu0 %v3491_v2  ;;  %3322 = vmatprep.subr.bf16.mxu1 %v3491_v2  ;;  %v3510_v51 = vld [vmem:[%s4644_s4 + $0x128] sm:$0xff]   ;;  %v3511_v52 = vld [vmem:[%s4644_s4 + $0x158] sm:$0xff]   ;;  %v3513_v54 = vld [vmem:[%s4644_s4 + $0x130] sm:$0xff]   ;;  %vm1047_vm5 = vsmask.f32 7424 }
  0x1d   : > { %s448_s28 = scalar_select %p447_p13, %s3675_s13, 1  ;;  %v3512_v53 = vld [vmem:[%s4644_s4 + $0xe8] sm:$0xff]   ;;  %v3514_v55 = vld [vmem:[%s4644_s4 + $0x160] sm:$0xff]   ;;  %v3515_v56 = vld [vmem:[%s4644_s4 + $0xf0] sm:$0xff]  }
  0x1e   : > { %s4685_s26 = smov (!%p2656_p0, %s446_s26), 15  ;;  %s4687_s17 = smov (!%p463_p1, %s3817_s17), 15  ;;  %v3516_v57 = vld [vmem:[%s4644_s4 + $0x138] sm:$0xff]   ;;  %v3517_v58 = vld [vmem:[%s4644_s4 + $0x168] sm:$0xff]   ;;  %v3519_v60 = vld [vmem:[%s4644_s4 + $0x170] sm:$0xff]  }
  0x1f   : > { %s3828_s19 = sshll.u32 %s448_s28, 5  ;;  %s2661_s25 = sshll.u32 %s4685_s26, 1  ;;  %3161 = vmatpush3.bf16.msra.mxu0 %v3491_v2  ;;  %3330 = vmatpush3.bf16.msra.mxu1 %v3491_v2  ;;  %v3518_v59 = vld [vmem:[%s4644_s4 + $0xf8] sm:$0xff]   ;;  %v3961_v62 = vld [vmem:[%s4644_s4 + $0x80] sm:$0xff]   ;;  %vm4019_vm6 = vmand %vm1003_vm2, %vm1004_vm3 }
  0x20   : > { %s453_s21 = sadd.s32 %s3828_s19, %s2661_s25  ;;  %3162 = vmatprep.subr.bf16.mxu0 %v3492_v3  ;;  %3323 = vmatprep.subr.bf16.mxu1 %v3492_v3  ;;  %s4689_s24 = smov (!%p3835_p2, %s472_s24), 15  ;;  %v3520_v61 = vld [vmem:[%s4644_s4 + $0x178] sm:$0xff]   ;;  %v3528_v63 = vld [vmem:[%s4644_s4 + $0x40] sm:$0xff]   ;;  %vm4023_vm7 = vmand %vm1046_vm4, %vm1047_vm5 }
  0x21   : > { %s2663_s29 = sshll.u32 %s453_s21, 3  ;;  %s2665_s21 = sshll.u32 %s4687_s17, 1  ;;  %v3972_v0 = vld [vmem:[%s4646_s6] ss:$0 sm:$0xff] }
  0x22   : > { %s455_s26 = scalar_lea.vmem %s4662_s0, %s2663_s29  ;;  %s467_s28 = sadd.s32 %s2665_s21, %s3828_s19 }
  0x23   : > { %v492_v5 = vld [vmem:[%s455_s26] sm:$0xff]  ;;  %v493_v6 = vld [vmem:[%s455_s26 + $0x8] sm:$0xff]  ;;  %3163 = vmatpush3.bf16.msra.mxu0 %v3492_v3  ;;  %3331 = vmatpush3.bf16.msra.mxu1 %v3492_v3  ;;  %s2667_s14 = sshll.u32 %s467_s28, 3  ;;  %s4691_s24 = smov (!%p3835_p2, %s4689_s24), 15 }
  0x24   : > { %v512_v7 = vpack.c.bf16 %v493_v6, %v492_v5  ;;  %3164 = vmatprep.subr.bf16.mxu0 %v3493_v4  ;;  %3324 = vmatprep.subr.bf16.mxu1 %v3493_v4  ;;  %s3861_s25 = scalar_lea.vmem %s4641_s1, %s2667_s14  ;;  %s2672_s17 = sshll.u32 %s4691_s24, 1 }
  0x25   : > { %s481_s15 = sadd.s32 %s2672_s17, %s3828_s19  ;;  %v508_v11 = vld [vmem:[%s3861_s25 + $0x70] sm:$0xff]  ;;  %v494_v12 = vld [vmem:[%s3861_s25] sm:$0xff]  ;;  %v495_v13 = vld [vmem:[%s3861_s25 + $0x8] sm:$0xff]  ;;  %s440_s14 = sand.u32 1, %s3663_s10  }
  0x26   : > { %3172 = vmatprep.mubr.bf16.mxu0 %v512_v7  ;;  %s2674_s0 = sshll.u32 %s481_s15, 3  ;;  %v509_v14 = vld [vmem:[%s3861_s25 + $0x78] sm:$0xff]  ;;  %v496_v15 = vld [vmem:[%s3861_s25 + $0x10] sm:$0xff]  ;;  %v513_v23 = vpack.c.bf16 %v495_v13, %v494_v12  ;;  %v498_v28 = vld [vmem:[%s3861_s25 + $0x20] sm:$0xff]  ;;  %s2653_s24 = sshll.u32 %s440_s14, 7 }
  0x27   : > { %3165 = vmatpush3.bf16.msra.mxu0 %v3493_v4  ;;  %3332 = vmatpush3.bf16.msra.mxu1 %v3493_v4  ;;  %s483_s29 = scalar_lea.vmem %s4642_s2, %s2674_s0  ;;  %v497_v16 = vld [vmem:[%s3861_s25 + $0x18] sm:$0xff]  ;;  %v520_v17 = vpack.c.bf16 %v509_v14, %v508_v11  ;;  %v499_v29 = vld [vmem:[%s3861_s25 + $0x28] sm:$0xff]  ;;  %v500_v31 = vld [vmem:[%s3861_s25 + $0x30] sm:$0xff]  ;;  %s4534_s18 = scalar_lea.vmem [#allocation2], %s2653_s24 }
  0x28   : > { %3166 = vmatprep.subr.bf16.mxu0 %v3494_v8  ;;  %3325 = vmatprep.subr.bf16.mxu1 %v3494_v8  ;;  %v510_v18 = vld [vmem:[%s483_s29] sm:$0xff]  ;;  %v511_v19 = vld [vmem:[%s483_s29 + $0x8] sm:$0xff]  ;;  %v514_v26 = vpack.c.bf16 %v497_v16, %v496_v15  ;;  %v501_v32 = vld [vmem:[%s3861_s25 + $0x38] sm:$0xff]  ;;  %v515_v35 = vpack.c.bf16 %v499_v29, %v498_v28  ;;  %s810_s17 = scalar_select %p491_p4, 1, 0 }
  0x29   : > { %3188 = vmatprep.mubr.bf16.mxu1 %v520_v17  ;;  %v521_v24 = vpack.c.bf16 %v511_v19, %v510_v18  ;;  %v516_v37 = vpack.c.bf16 %v501_v32, %v500_v31  ;;  %v502_v38 = vld [vmem:[%s3861_s25 + $0x40] sm:$0xff]  ;;  %v503_v39 = vld [vmem:[%s3861_s25 + $0x48] sm:$0xff]  ;;  %v504_v41 = vld [vmem:[%s3861_s25 + $0x50] sm:$0xff]  ;;  %s767_s15 = scalar_select %p490_p5, 1, 0 }
  0x2a   : > { %v505_v42 = vld [vmem:[%s3861_s25 + $0x58] sm:$0xff]  ;;  %v517_v43 = vpack.c.bf16 %v503_v39, %v502_v38  ;;  %v506_v45 = vld [vmem:[%s3861_s25 + $0x60] sm:$0xff]  ;;  %v507_v46 = vld [vmem:[%s3861_s25 + $0x68] sm:$0xff]  ;;  %v811_v1 = vstv %s810_s17  ;;  %s2881_s26 = sshll.u32 %s3671_s12, 4  ;;  %s2875_s17 = sshll.u32 %s3675_s13, 5 }
  0x2b   : > { %3167 = vmatpush3.bf16.msra.mxu0 %v3494_v8  ;;  %3333 = vmatpush3.bf16.msra.mxu1 %v3494_v8  ;;  %v518_v44 = vpack.c.bf16 %v505_v42, %v504_v41  ;;  %v519_v47 = vpack.c.bf16 %v507_v46, %v506_v45  ;;  %v768_v3 = vstv %s767_s15  ;;  %vm3977_vm0 = vcmp.eq.s32.totalorder %v811_v1, 1  ;;  %v3555_v14 = vld [vmem:[%s4644_s4 + $0x1a8] sm:$0xff]   ;;  %v3569_v11 = vld [vmem:[%s4645_s5] sm:$0xff]   ;;  %s2512_s15 = sadd.s32 %s2881_s26, %s2875_s17  ;;  %s2515_s13 = sshll.u32 %s4534_s18, 4  ;;  %s4581_s13 = int_to_ptr.vmem [resolvable:$true] %s2515_s13 }
  0x2c   : > { %3168 = vmatprep.subr.bf16.mxu0 %v3495_v9  ;;  %3326 = vmatprep.subr.bf16.mxu1 %v3495_v9  ;;  %vm3982_vm1 = vcmp.eq.s32.totalorder %v768_v3, 1  ;;  %vm2857_vm10 = vmneg %vm3977_vm0  ;;  %s2876_s12 = sshll.u32 %s2512_s15, 7  ;;  %s4588_s20 = scalar_lea.sflag [#allocation3], %s440_s14 }
  0x2d   : > { %vm2780_vm8 = vmneg %vm3982_vm1  ;;  %s4579_s0 = scalar_lea.hbm %s4649_s9, %s2876_s12  ;;  %s3689_s29 = smov [#allocation2]  }
  0x2e   : > { %vm2782_vm9 = vmpackc.low %vm2780_vm8, %vm2780_vm8  ;;  %s3597_s19 = sshll.u32 %s3689_s29, 4  ;;  %s3598_s19 = int_to_ptr.vmem [resolvable:$false] %s3597_s19 }
  0x2f   : > { %3169 = vmatpush3.bf16.msra.mxu0 %v3495_v9  ;;  %3334 = vmatpush3.bf16.msra.mxu1 %v3495_v9  ;;  %vm2859_vm11 = vmpackc.low %vm2857_vm10, %vm2857_vm10  ;;  %s3599_s24 = scalar_lea.vmem %s3598_s19, 4096  ;;  %p3600_p10 = scmp.lt.s32.totalorder %s4581_s13, %s3598_s19 }
  0x30   : > { %3170 = vmatprep.subr.bf16.mxu0 %v3496_v10  ;;  %3327 = vmatprep.subr.bf16.mxu1 %v3496_v10 }
  0x33   : > { %3171 = vmatpush3.bf16.msra.mxu0 %v3496_v10  ;;  %3335 = vmatpush3.bf16.msra.mxu1 %v3496_v10 }
  0x34   : > { %2900 = vmatprep.subr.bf16.mxu1 %v3497_v20  ;;  %3192 = vmatprep.subr.bf16.mxu0 %v3502_v21 }
  0x36   : > { %3173 = vmatmul.mubr.bf16.vlgmr.msra.gmra.mrb[0].mxu0 %v513_v23  ;;  %3189 = vmatmul.mubr.bf16.vlgmr.msra.gmra.mrb[0].mxu1 %v521_v24 }
  0x37   : > { %3176 = vmatprep.mubr.bf16.mxu0 %v514_v26  ;;  %2901 = vmatpush3.bf16.msra.mxu1 %v3498_v22 }
  0x38   : > { %2902 = vmatprep.subr.bf16.mxu1 %v3499_v25  ;;  %3193 = vmatpush3.bf16.msra.mxu0 %v3502_v21 }
  0x39   : > { %3194 = vmatprep.subr.bf16.mxu0 %v3505_v27 }
  0x3b   : > { %2903 = vmatpush3.bf16.msra.mxu1 %v3500_v30 }
  0x3c   : > { %2904 = vmatprep.subr.bf16.mxu1 %v3501_v33  ;;  %3195 = vmatpush3.bf16.msra.mxu0 %v3505_v27 }
  0x3d   : > { %3196 = vmatprep.subr.bf16.mxu0 %v3508_v49 }
  0x3e   : > { %3177 = vmatmul.mubr.bf16.gmra.mrb[4].mxu0 %v515_v35 }
  0x3f   : > { %3180 = vmatprep.mubr.bf16.mxu0 %v516_v37  ;;  %2905 = vmatpush3.bf16.msra.mxu1 %v3503_v34 }
  0x40   : > { %2906 = vmatprep.subr.bf16.mxu1 %v3504_v36  ;;  %3197 = vmatpush3.bf16.msra.mxu0 %v3508_v49 }
  0x41   : > { %3198 = vmatprep.subr.bf16.mxu0 %v3511_v52 }
  0x43   : > { %2907 = vmatpush3.bf16.msra.mxu1 %v3506_v40 }
  0x44   : > { %2908 = vmatprep.subr.bf16.mxu1 %v3507_v48  ;;  %3199 = vmatpush3.bf16.msra.mxu0 %v3511_v52 }
  0x45   : > { %3200 = vmatprep.subr.bf16.mxu0 %v3514_v55 }
  0x46   : > { %3181 = vmatmul.mubr.bf16.gmra.mrb[8].mxu0 %v517_v43 }
  0x47   : > { %3184 = vmatprep.mubr.bf16.mxu0 %v518_v44  ;;  %2909 = vmatpush3.bf16.msra.mxu1 %v3509_v50  ;;  %v3572_v50 = vld [vmem:[%s4645_s5 + $0x18] sm:$0xff]  }
  0x48   : > { %2910 = vmatprep.subr.bf16.mxu1 %v3510_v51  ;;  %3201 = vmatpush3.bf16.msra.mxu0 %v3514_v55  ;;  %v3573_v55 = vld [vmem:[%s4645_s5 + $0x20] sm:$0xff]  }
  0x49   : > { %3202 = vmatprep.subr.bf16.mxu0 %v3517_v58 }
  0x4b   : > { %2911 = vmatpush3.bf16.msra.mxu1 %v3512_v53 }
  0x4c   : > { %2912 = vmatprep.subr.bf16.mxu1 %v3513_v54  ;;  %3203 = vmatpush3.bf16.msra.mxu0 %v3517_v58 }
  0x4d   : > { %3204 = vmatprep.subr.bf16.mxu0 %v3519_v60 }
  0x4e   : > { %3185 = vmatmul.mubr.bf16.gmra.mrb[12].mxu0 %v519_v47 }
  0x4f   : > { %2913 = vmatpush3.bf16.msra.mxu1 %v3515_v56  ;;  %v3529_v56 = vld [vmem:[%s4644_s4] sm:$0xff]  }
  0x50   : > { %2914 = vmatprep.subr.bf16.mxu1 %v3516_v57  ;;  %3205 = vmatpush3.bf16.msra.mxu0 %v3519_v60 }
  0x51   : > { %3206 = vmatprep.subr.bf16.mxu0 %v3520_v61 }
  0x53   : > { %2915 = vmatpush3.bf16.msra.mxu1 %v3518_v59 }
  0x54   : > { %3207 = vmatpush3.bf16.msra.mxu0 %v3520_v61  ;;  %2980 = vmatprep.subr.bf16.mxu1 %v3528_v63  ;;  %v3531_v61 = vld [vmem:[%s4644_s4 + $0x48] sm:$0xff]  }
  0x55   : > { %3224 = vmatprep.subr.bf16.mxu0 %v3961_v62 }
 0x109   : > { %v3174_v2 = vpop.f32.mrb[0].mxu0  ;;  %v3190_v4 = vpop.f32.mrb[0].mxu1 }
 0x10a   : > { %v636_v5 = vadd.f32 %v3174_v2, %v3972_v0  ;;  %v627_v6 = vpop.f32.mrb[1].mxu0  ;;  %v700_v7 = vadd.f32 %v3190_v4, %v3972_v0  ;;  %v691_v8 = vpop.f32.mrb[1].mxu1 }
 0x10b   : > { %v628_v9 = vadd.f32 %v3972_v0, %v627_v6  ;;  %v3175_v10 = vpop.f32.mrb[2].mxu0  ;;  %v692_v12 = vadd.f32 %v3972_v0, %v691_v8  ;;  %v3191_v13 = vpop.f32.mrb[2].mxu1 }
 0x10c   : > { %v639_v15 = vadd.f32 %v3175_v10, %v3972_v0  ;;  %v630_v16 = vpop.f32.mrb[3].mxu0  ;;  %v724_v17 = vmax.f32 %v700_v7, 0.0  ;;  %v703_v18 = vadd.f32 %v3191_v13, %v3972_v0  ;;  %v694_v19 = vpop.f32.mrb[3].mxu1  ;;  %v708_v24 = vmax.f32 %v636_v5, 0.0 }
 0x10d   : > { %v706_v20 = vmax.f32 %v628_v9, 0.0  ;;  %v631_v21 = vadd.f32 %v3972_v0, %v630_v16  ;;  %v722_v22 = vmax.f32 %v692_v12, 0.0  ;;  %v695_v23 = vadd.f32 %v3972_v0, %v694_v19  ;;  %v3532_v9 = vld [vmem:[%s4644_s4 + $0x8] sm:$0xff]  }
 0x10e   : > { %v709_v25 = vmax.f32 %v639_v15, 0.0  ;;  %v911_v26 = vsel %vm3977_vm0, 0.0, %v724_v17  ;;  %v725_v27 = vmax.f32 %v703_v18, 0.0 }
 0x10f   : > { %v707_v28 = vmax.f32 %v631_v21, 0.0  ;;  %v723_v29 = vmax.f32 %v695_v23, 0.0  ;;  %v893_v30 = vsel %vm3982_vm1, 0.0, %v706_v20 }
 0x110   : > { %v3994_v31 = vpack.c.bf16 %v709_v25, %v708_v24  ;;  %v912_v32 = vsel %vm3977_vm0, 0.0, %v725_v27  ;;  %v3998_v33 = vpack.c.bf16 %v725_v27, %v724_v17  ;;  %v3534_v17 = vld [vmem:[%s4644_s4 + $0x50] sm:$0xff]  }
 0x111   : > { %v894_v34 = vsel %vm3982_vm1, 0.0, %v707_v28  ;;  %v4002_v35 = vpack.c.bf16 %v707_v28, %v706_v20  ;;  %v3178_v36 = vpop.f32.mrb[4].mxu0  ;;  %v4004_v37 = vpack.c.bf16 %v912_v32, %v911_v26  ;;  %v4006_v38 = vpack.c.bf16 %v723_v29, %v722_v22 }
 0x112   : > { %v4008_v39 = vpack.c.bf16 %v894_v34, %v893_v30  ;;  %v652_v40 = vadd.f32 %v3178_v36, %v3972_v0  ;;  %v643_v41 = vpop.f32.mrb[5].mxu0  ;;  %1332 = vmatprep.mubr.bf16.mxu1 %v3994_v31  ;;  %v931_v42 = vshrl.u32 %v3994_v31, 16  ;;  %v934_v43 = vshll.u32 %v3994_v31, 16 }
 0x113   : > { %v644_v44 = vadd.f32 %v3972_v0, %v643_v41  ;;  %v3179_v45 = vpop.f32.mrb[6].mxu0  ;;  %v987_v16 = vshrl.u32 %v4004_v37, 16 }
 0x114   : > { %v655_v46 = vadd.f32 %v3179_v45, %v3972_v0  ;;  %v646_v47 = vpop.f32.mrb[7].mxu0  ;;  %v933_v48 = vrot.slane %v931_v42, 7  ;;  %v1018_v51 = vrot.slane %v934_v43, 1  ;;  %v712_v52 = vmax.f32 %v652_v40, 0.0 }
 0x115   : > { %v647_v49 = vadd.f32 %v3972_v0, %v646_v47  ;;  %v924_v57 = vshrl.u32 %v4008_v39, 16  ;;  %v710_v58 = vmax.f32 %v644_v44, 0.0  ;;  %v927_v18 = vshll.u32 %v4008_v39, 16  ;;  %v3554_v39 = vld [vmem:[%s4644_s4 + $0x78] sm:$0xff]  }
 0x116   : > { %v713_v53 = vmax.f32 %v655_v46, 0.0  ;;  %v936_v54 = vor.u32 %v934_v43, %v933_v48  ;;  %v1019_v60 = vor.u32 %v1018_v51, %v931_v42  ;;  %v989_v40 = vrot.slane %v987_v16, 7  ;;  %v3522_v42 = vld [vmem:[%s4644_s4 + $0x88] sm:$0xff]  }
 0x117   : > { %v711_v59 = vmax.f32 %v647_v49, 0.0  ;;  %v926_v8 = vrot.slane %v924_v57, 7  ;;  %v3536_v49 = vld [vmem:[%s4644_s4 + $0x10] sm:$0xff]   ;;  %v990_v51 = vshll.u32 %v4004_v37, 16 }
 0x118   : > { %v4034_v63 = vpack.c.bf16 %v713_v53, %v712_v52  ;;  %v4038_v1 = vsel %vm4019_vm6, 0, %v936_v54  ;;  %v4045_v4 = vsel %vm4023_vm7, %v1019_v60, 0 }
 0x119   : > { %v4040_v2 = vpack.c.bf16 %v711_v59, %v710_v58  ;;  %v3182_v3 = vpop.f32.mrb[8].mxu0  ;;  %1333 = vmatmul.mubr.bf16.vlgmr.msra.gmra.mrb[4].mxu1 %v4038_v1  ;;  %3208 = vmatprep.mubr.bf16.mxu0 %v4045_v4  ;;  %v4069_v30 = vor.u32 %v927_v18, %v926_v8 }
 0x11a   : > { %v668_v5 = vadd.f32 %v3182_v3, %v3972_v0  ;;  %v659_v6 = vpop.f32.mrb[9].mxu0  ;;  %v948_v7 = vshll.u32 %v4034_v63, 16  ;;  %2981 = vmatpush3.bf16.msra.mxu1 %v3529_v56  ;;  %v945_v21 = vshrl.u32 %v4034_v63, 16  ;;  %v3538_v56 = vld [vmem:[%s4644_s4 + $0x58] sm:$0xff]   ;;  %v4110_v3 = vor.u32 %v990_v51, %v989_v40 }
 0x11b   : > { %v660_v10 = vadd.f32 %v3972_v0, %v659_v6  ;;  %v3183_v12 = vpop.f32.mrb[10].mxu0  ;;  %1340 = vmatprep.mubr.bf16.mxu1 %v4040_v2  ;;  %v938_v13 = vshrl.u32 %v4040_v2, 16  ;;  %v941_v15 = vshll.u32 %v4040_v2, 16  ;;  %2982 = vmatprep.subr.bf16.mxu1 %v3531_v61  ;;  %v1006_v44 = vsel %vm4019_vm6, 0, %v4069_v30  ;;  %v3562_v30 = vld [vmem:[%s4644_s4 + $0x208] sm:$0xff]  }
 0x11c   : > { %v671_v19 = vadd.f32 %v3183_v12, %v3972_v0  ;;  %v662_v20 = vpop.f32.mrb[11].mxu0  ;;  %v1022_v22 = vrot.slane %v948_v7, 1  ;;  %v716_v23 = vmax.f32 %v668_v5, 0.0  ;;  %v947_v43 = vrot.slane %v945_v21, 7 }
 0x11d   : > { %v663_v24 = vadd.f32 %v3972_v0, %v662_v20  ;;  %v940_v25 = vrot.slane %v938_v13, 7  ;;  %v1020_v26 = vrot.slane %v941_v15, 1  ;;  %v714_v27 = vmax.f32 %v660_v10, 0.0 }
 0x11e   : > { %v717_v28 = vmax.f32 %v671_v19, 0.0  ;;  %v1023_v29 = vor.u32 %v1022_v22, %v945_v21  ;;  %2983 = vmatpush3.bf16.msra.mxu1 %v3532_v9  ;;  %v950_v8 = vor.u32 %v948_v7, %v947_v43  ;;  %v1015_v7 = vsel %vm4019_vm6, 0, %v4110_v3 }
 0x11f   : > { %v715_v32 = vmax.f32 %v663_v24, 0.0  ;;  %v943_v34 = vor.u32 %v941_v15, %v940_v25  ;;  %v1021_v36 = vor.u32 %v1020_v26, %v938_v13  ;;  %2984 = vmatprep.subr.bf16.mxu1 %v3534_v17  ;;  %v3540_v17 = vld [vmem:[%s4644_s4 + $0x18] sm:$0xff]   ;;  %v1034_v24 = vrot.slane %v990_v51, 1 }
 0x120   : > { %v4073_v41 = vpack.c.bf16 %v717_v28, %v716_v23  ;;  %v4107_v60 = vsel %vm4023_vm7, %v1023_v29, 0  ;;  %v4132_v26 = vsel %vm4019_vm6, 0, %v950_v8 }
 0x121   : > { %v4081_v45 = vpack.c.bf16 %v715_v32, %v714_v27  ;;  %v3186_v46 = vpop.f32.mrb[12].mxu0  ;;  %v4085_v47 = vsel %vm4019_vm6, 0, %v943_v34  ;;  %v4089_v48 = vsel %vm4023_vm7, %v1021_v36, 0  ;;  %v3524_v27 = vld [vmem:[%s4644_s4 + $0x98] sm:$0xff]   ;;  %v3542_v34 = vld [vmem:[%s4644_s4 + $0x60] sm:$0xff]   ;;  %v4148_v36 = vor.u32 %v1034_v24, %v987_v16  ;;  %v3546_v16 = vld [vmem:[%s4644_s4 + $0x68] sm:$0xff]  }
 0x122   : > { %v684_v52 = vadd.f32 %v3186_v46, %v3972_v0  ;;  %v675_v53 = vpop.f32.mrb[13].mxu0  ;;  %1341 = vmatmul.mubr.bf16.gmra.mrb[8].mxu1 %v4085_v47  ;;  %3209 = vmatmul.mubr.bf16.vlgmr.msra.gmra.mrb[16].mxu0 %v4089_v48  ;;  %v962_v54 = vshll.u32 %v4073_v41, 16  ;;  %v959_v15 = vshrl.u32 %v4073_v41, 16 }
 0x123   : > { %v676_v58 = vadd.f32 %v3972_v0, %v675_v53  ;;  %3225 = vmatpush3.bf16.msra.mxu0 %v3961_v62  ;;  %v3187_v59 = vpop.f32.mrb[14].mxu0  ;;  %1348 = vmatprep.mubr.bf16.mxu1 %v4034_v63  ;;  %v955_v61 = vshll.u32 %v4081_v45, 16  ;;  %v3523_v62 = vld [vmem:[%s4644_s4 + $0x90] sm:$0xff]   ;;  %v952_v12 = vshrl.u32 %v4081_v45, 16  ;;  %v1058_v46 = vsel %vm4023_vm7, %v4148_v36, 0 }
 0x124   : > { %v687_v5 = vadd.f32 %v3187_v59, %v3972_v0  ;;  %3212 = vmatprep.mubr.bf16.mxu0 %v4107_v60  ;;  %v678_v6 = vpop.f32.mrb[15].mxu0  ;;  %3226 = vmatprep.subr.bf16.mxu0 %v3522_v42  ;;  %v1026_v9 = vrot.slane %v962_v54, 1  ;;  %v720_v19 = vmax.f32 %v684_v52, 0.0  ;;  %v983_v52 = vshll.u32 %v4006_v38, 16 }
 0x125   : > { %v679_v10 = vadd.f32 %v3972_v0, %v678_v6  ;;  %v1024_v13 = vrot.slane %v955_v61, 1  ;;  %2985 = vmatpush3.bf16.msra.mxu1 %v3536_v49  ;;  %v718_v20 = vmax.f32 %v676_v58, 0.0  ;;  %v954_v32 = vrot.slane %v952_v12, 7  ;;  %v3525_v49 = vld [vmem:[%s4644_s4 + $0xa0] sm:$0xff]  }
 0x126   : > { %v721_v21 = vmax.f32 %v687_v5, 0.0  ;;  %2986 = vmatprep.subr.bf16.mxu1 %v3538_v56  ;;  %v1027_v23 = vor.u32 %v1026_v9, %v959_v15  ;;  %v961_v9 = vrot.slane %v959_v15, 7 }
 0x127   : > { %v719_v22 = vmax.f32 %v679_v10, 0.0  ;;  %3227 = vmatpush3.bf16.msra.mxu0 %v3522_v42  ;;  %v1025_v0 = vor.u32 %v1024_v13, %v952_v12  ;;  %v3544_v42 = vld [vmem:[%s4644_s4 + $0x20] sm:$0xff]   ;;  %v957_v53 = vor.u32 %v955_v61, %v954_v32  ;;  %v1032_v10 = vrot.slane %v983_v52, 1  ;;  %v3548_v12 = vld [vmem:[%s4644_s4 + $0x28] sm:$0xff]   ;;  %v3550_v13 = vld [vmem:[%s4644_s4 + $0x70] sm:$0xff]  }
 0x128   : > { %v4128_v25 = vpack.c.bf16 %v721_v21, %v720_v19  ;;  %3228 = vmatprep.subr.bf16.mxu0 %v3523_v62  ;;  %v4159_v43 = vsel %vm4023_vm7, %v1027_v23, 0  ;;  %v1016_v19 = vrot.slane %v927_v18, 1  ;;  %v964_v21 = vor.u32 %v962_v54, %v961_v9  ;;  %v3530_v23 = vld [vmem:[%s4644_s4 + $0xb8] sm:$0xff]  }
 0x129   : > { %v4137_v28 = vpack.c.bf16 %v719_v22, %v718_v20  ;;  %v4141_v29 = vsel %vm4023_vm7, %v1025_v0, 0  ;;  %2987 = vmatpush3.bf16.msra.mxu1 %v3540_v17  ;;  %v4182_v8 = vsel %vm4019_vm6, 0, %v957_v53  ;;  %v980_v17 = vshrl.u32 %v4006_v38, 16  ;;  %v3527_v20 = vld [vmem:[%s4644_s4 + $0xb0] sm:$0xff]  }
 0x12a   : > { %1349 = vmatmul.mubr.bf16.gmra.mrb[12].mxu1 %v4132_v26  ;;  %3213 = vmatmul.mubr.bf16.gmra.mrb[20].mxu0 %v4141_v29  ;;  %v976_v40 = vshll.u32 %v4128_v25, 16  ;;  %v973_v59 = vshrl.u32 %v4128_v25, 16  ;;  %v3552_v0 = vld [vmem:[%s4644_s4 + $0x30] sm:$0xff]   ;;  %v1017_v18 = vor.u32 %v1016_v19, %v924_v57  ;;  %v4222_v24 = vsel %vm4019_vm6, 0, %v964_v21  ;;  %v3556_v57 = vld [vmem:[%s4644_s4 + $0x38] sm:$0xff]  }
 0x12b   : > { %3229 = vmatpush3.bf16.msra.mxu0 %v3523_v62  ;;  %1356 = vmatprep.mubr.bf16.mxu1 %v4081_v45  ;;  %v969_v37 = vshll.u32 %v4137_v28, 16  ;;  %v966_v56 = vshrl.u32 %v4137_v28, 16  ;;  %v3526_v62 = vld [vmem:[%s4644_s4 + $0xa8] sm:$0xff]   ;;  %v1033_v22 = vor.u32 %v1032_v10, %v980_v17  ;;  %v3551_v10 = vld [vmem:[%s4644_s4 + $0x1a0] sm:$0xff]   ;;  %v3560_v19 = vld [vmem:[%s4644_s4 + $0x1b8] sm:$0xff]  }
 0x12c   : > { %3216 = vmatprep.mubr.bf16.mxu0 %v4159_v43  ;;  %3230 = vmatprep.subr.bf16.mxu0 %v3524_v27  ;;  %v1030_v51 = vrot.slane %v976_v40, 1  ;;  %v1049_v32 = vsel %vm4023_vm7, %v1017_v18, 0  ;;  %v975_v53 = vrot.slane %v973_v59, 7  ;;  %v3576_v21 = vld [vmem:[%s4645_s5 + $0x38] sm:$0xff]  }
 0x12d   : > { %v1028_v58 = vrot.slane %v969_v37, 1  ;;  %2988 = vmatprep.subr.bf16.mxu1 %v3542_v34  ;;  %v4226_v54 = vsel %vm4023_vm7, %v1033_v22, 0  ;;  %v3533_v34 = vld [vmem:[%s4644_s4 + $0x1c0] sm:$0xff]  }
 0x12e   : > { %2989 = vmatpush3.bf16.msra.mxu1 %v3544_v42  ;;  %v1031_v6 = vor.u32 %v1030_v51, %v973_v59  ;;  %v3545_v59 = vld [vmem:[%s4644_s4 + $0x1d8] sm:$0xff]  }
 0x12f   : > { %3231 = vmatpush3.bf16.msra.mxu0 %v3524_v27  ;;  %v1029_v5 = vor.u32 %v1028_v58, %v966_v56  ;;  %2990 = vmatprep.subr.bf16.mxu1 %v3546_v16  ;;  %v968_v27 = vrot.slane %v966_v56, 7  ;;  %v3535_v16 = vld [vmem:[%s4644_s4 + $0x180] sm:$0xff]   ;;  %v3541_v56 = vld [vmem:[%s4644_s4 + $0x1d0] sm:$0xff]   ;;  %v978_v58 = vor.u32 %v976_v40, %v975_v53  ;;  %v3547_v40 = vld [vmem:[%s4644_s4 + $0x198] sm:$0xff]  }
 0x130   : > { %3232 = vmatprep.subr.bf16.mxu0 %v3525_v49  ;;  %v4201_v15 = vsel %vm4023_vm7, %v1031_v6, 0  ;;  %v982_v6 = vrot.slane %v980_v17, 7  ;;  %v3558_v17 = vld [vmem:[%s4644_s4 + $0x1b0] sm:$0xff]  }
 0x131   : > { %v4186_v61 = vsel %vm4023_vm7, %v1029_v5, 0  ;;  %v971_v42 = vor.u32 %v969_v37, %v968_v27  ;;  %v3539_v37 = vld [vmem:[%s4644_s4 + $0x188] sm:$0xff]   ;;  %v4272_v5 = vsel %vm4019_vm6, 0, %v978_v58 }
 0x132   : > { %1357 = vmatmul.mubr.bf16.gmra.mrb[16].mxu1 %v4182_v8  ;;  %3217 = vmatmul.mubr.bf16.gmra.mrb[24].mxu0 %v4186_v61  ;;  %v985_v9 = vor.u32 %v983_v52, %v982_v6  ;;  %v3557_v52 = vld [vmem:[%s4644_s4 + $0x1f0] sm:$0xff]  }
 0x133   : > { %3233 = vmatpush3.bf16.msra.mxu0 %v3525_v49  ;;  %1364 = vmatprep.mubr.bf16.mxu1 %v4073_v41  ;;  %v3537_v49 = vld [vmem:[%s4644_s4 + $0x1c8] sm:$0xff]   ;;  %v4250_v51 = vsel %vm4019_vm6, 0, %v971_v42 }
 0x134   : > { %3220 = vmatprep.mubr.bf16.mxu0 %v4201_v15  ;;  %3234 = vmatprep.subr.bf16.mxu0 %v3526_v62 }
 0x135   : > { %2991 = vmatpush3.bf16.msra.mxu1 %v3548_v12  ;;  %v3553_v12 = vld [vmem:[%s4644_s4 + $0x1e8] sm:$0xff]  }
 0x136   : > { %2992 = vmatprep.subr.bf16.mxu1 %v3550_v13  ;;  %v4296_v13 = vsel %vm4019_vm6, 0, %v985_v9 }
 0x137   : > { %3235 = vmatpush3.bf16.msra.mxu0 %v3526_v62  ;;  %v3549_v62 = vld [vmem:[%s4644_s4 + $0x1e0] sm:$0xff]  }
 0x138   : > { %3236 = vmatprep.subr.bf16.mxu0 %v3527_v20 }
 0x139   : > { %2993 = vmatpush3.bf16.msra.mxu1 %v3552_v0 }
 0x13a   : > { %1365 = vmatmul.mubr.bf16.gmra.mrb[20].mxu1 %v4222_v24  ;;  %3221 = vmatmul.mubr.bf16.gmra.mrb[28].mxu0 %v4226_v54 }
 0x13b   : > { %3237 = vmatpush3.bf16.msra.mxu0 %v3527_v20  ;;  %1372 = vmatprep.mubr.bf16.mxu1 %v4137_v28  ;;  %v3561_v20 = vld [vmem:[%s4644_s4 + $0x200] sm:$0xff]  }
 0x13c   : > { %3240 = vmatprep.mubr.bf16.mxu0 %v1049_v32  ;;  %3238 = vmatprep.subr.bf16.mxu0 %v3530_v23 }
 0x13d   : > { %2994 = vmatprep.subr.bf16.mxu1 %v3554_v39 }
 0x13e   : > { %2995 = vmatpush3.bf16.msra.mxu1 %v3556_v57 }
 0x13f   : > { %3239 = vmatpush3.bf16.msra.mxu0 %v3530_v23  ;;  %3288 = vmatprep.subr.bf16.mxu1 %v3569_v11 }
 0x140   : > { %3060 = vmatprep.subr.bf16.mxu0 %v3533_v34 }
 0x142   : > { %1373 = vmatmul.mubr.bf16.gmra.mrb[24].mxu1 %v4250_v51  ;;  %3241 = vmatmul.mubr.bf16.vlgmr.msra.gmra.mrb[16].mxu0 %v4045_v4  ;;  %v3543_v4 = vld [vmem:[%s4644_s4 + $0x190] sm:$0xff]  }
 0x143   : > { %3061 = vmatpush3.bf16.msra.mxu0 %v3535_v16  ;;  %1380 = vmatprep.mubr.bf16.mxu1 %v4128_v25 }
 0x144   : > { %3244 = vmatprep.mubr.bf16.mxu0 %v4089_v48  ;;  %3062 = vmatprep.subr.bf16.mxu0 %v3537_v49 }
 0x147   : > { %3063 = vmatpush3.bf16.msra.mxu0 %v3539_v37 }
 0x148   : > { %3064 = vmatprep.subr.bf16.mxu0 %v3541_v56 }
 0x14a   : > { %1381 = vmatmul.mubr.bf16.gmra.mrb[28].mxu1 %v4272_v5  ;;  %3245 = vmatmul.mubr.bf16.gmra.mrb[20].mxu0 %v4107_v60 }
 0x14b   : > { %3065 = vmatpush3.bf16.msra.mxu0 %v3543_v4  ;;  %1388 = vmatprep.mubr.bf16.mxu1 %v4006_v38 }
 0x14c   : > { %3248 = vmatprep.mubr.bf16.mxu0 %v4141_v29  ;;  %3066 = vmatprep.subr.bf16.mxu0 %v3545_v59 }
 0x14f   : > { %3067 = vmatpush3.bf16.msra.mxu0 %v3547_v40 }
 0x150   : > { %3068 = vmatprep.subr.bf16.mxu0 %v3549_v62 }
 0x152   : > { %1389 = vmatmul.mubr.bf16.gmra.mrb[32].mxu1 %v4296_v13  ;;  %3249 = vmatmul.mubr.bf16.gmra.mrb[24].mxu0 %v4159_v43 }
 0x153   : > { %3069 = vmatpush3.bf16.msra.mxu0 %v3551_v10  ;;  %2784 = vmatprep.mubr.msk.bf16.mxu1 %vm2782_vm9, %v4002_v35  ;;  %v3559_v35 = vld [vmem:[%s4644_s4 + $0x1f8] sm:$0xff]  }
 0x154   : > { %3252 = vmatprep.mubr.bf16.mxu0 %v4186_v61  ;;  %3070 = vmatprep.subr.bf16.mxu0 %v3553_v12 }
 0x157   : > { %3071 = vmatpush3.bf16.msra.mxu0 %v3555_v14 }
 0x158   : > { %3072 = vmatprep.subr.bf16.mxu0 %v3557_v52 }
 0x15a   : > { %1671 = vmatmul.mubr.bf16.vlgmr.msra.gmra.mrb[36].mxu1 %v1006_v44  ;;  %3253 = vmatmul.mubr.bf16.gmra.mrb[28].mxu0 %v4201_v15  ;;  %v3564_v44 = vld [vmem:[%s4644_s4 + $0x218] sm:$0xff]  }
 0x15b   : > { %3073 = vmatpush3.bf16.msra.mxu0 %v3558_v17  ;;  %1678 = vmatprep.mubr.bf16.mxu1 %v3994_v31  ;;  %v3563_v31 = vld [vmem:[%s4644_s4 + $0x210] sm:$0xff]  }
 0x15c   : > { %2057 = vmatprep.mubr.bf16.mxu0 %v4040_v2  ;;  %3074 = vmatprep.subr.bf16.mxu0 %v3559_v35 }
 0x15d   : > { %3289 = vmatpush3.bf16.msra.mxu1 %v3569_v11 }
 0x15f   : > { %3075 = vmatpush3.bf16.msra.mxu0 %v3560_v19 }
 0x160   : > { %3256 = vmatprep.subr.bf16.mxu0 %v3561_v20 }
 0x162   : > { %1679 = vmatmul.mubr.bf16.gmra.mrb[40].mxu1 %v4038_v1  ;;  %2058 = vmatmul.mubr.bf16.vlgmr.msra.gmra.mrb[32].mxu0 %v4085_v47  ;;  %v3565_v1 = vld [vmem:[%s4644_s4 + $0x220] sm:$0xff]  }
 0x163   : > { %3257 = vmatpush3.bf16.msra.mxu0 %v3561_v20  ;;  %1686 = vmatprep.mubr.bf16.mxu1 %v4040_v2  ;;  %v3566_v2 = vld [vmem:[%s4644_s4 + $0x228] sm:$0xff]  }
 0x164   : > { %2065 = vmatprep.mubr.bf16.mxu0 %v4034_v63  ;;  %3258 = vmatprep.subr.bf16.mxu0 %v3562_v30 }
 0x167   : > { %3259 = vmatpush3.bf16.msra.mxu0 %v3562_v30 }
 0x168   : > { %3260 = vmatprep.subr.bf16.mxu0 %v3563_v31 }
 0x16a   : > { %1687 = vmatmul.mubr.bf16.gmra.mrb[44].mxu1 %v4085_v47  ;;  %2066 = vmatmul.mubr.bf16.gmra.mrb[36].mxu0 %v4132_v26  ;;  %v3568_v47 = vld [vmem:[%s4644_s4 + $0x238] sm:$0xff]  }
 0x16b   : > { %1694 = vmatprep.mubr.bf16.mxu1 %v4034_v63  ;;  %2073 = vmatprep.mubr.bf16.mxu0 %v4081_v45  ;;  %v3567_v63 = vld [vmem:[%s4644_s4 + $0x230] sm:$0xff]  }
 0x16c   : > { %3261 = vmatpush3.bf16.msra.mxu0 %v3563_v31 }
 0x16d   : > { %3262 = vmatprep.subr.bf16.mxu0 %v3564_v44 }
 0x170   : > { %3263 = vmatpush3.bf16.msra.mxu0 %v3564_v44 }
 0x171   : > { %3264 = vmatprep.subr.bf16.mxu0 %v3565_v1 }
 0x172   : > { %1695 = vmatmul.mubr.bf16.gmra.mrb[48].mxu1 %v4132_v26  ;;  %2074 = vmatmul.mubr.bf16.gmra.mrb[40].mxu0 %v4182_v8  ;;  %v3575_v26 = vld [vmem:[%s4645_s5 + $0x30] sm:$0xff]  }
 0x173   : > { %1702 = vmatprep.mubr.bf16.mxu1 %v4081_v45  ;;  %2081 = vmatprep.mubr.bf16.mxu0 %v4073_v41 }
 0x174   : > { %3265 = vmatpush3.bf16.msra.mxu0 %v3565_v1 }
 0x175   : > { %3266 = vmatprep.subr.bf16.mxu0 %v3566_v2 }
 0x178   : > { %3267 = vmatpush3.bf16.msra.mxu0 %v3566_v2 }
 0x179   : > { %3268 = vmatprep.subr.bf16.mxu0 %v3567_v63 }
 0x17a   : > { %1703 = vmatmul.mubr.bf16.gmra.mrb[52].mxu1 %v4182_v8  ;;  %2082 = vmatmul.mubr.bf16.gmra.mrb[44].mxu0 %v4222_v24 }
 0x17b   : > { %1710 = vmatprep.mubr.bf16.mxu1 %v4073_v41  ;;  %2089 = vmatprep.mubr.bf16.mxu0 %v4137_v28  ;;  %v3574_v41 = vld [vmem:[%s4645_s5 + $0x28] sm:$0xff]  }
 0x17c   : > { %3269 = vmatpush3.bf16.msra.mxu0 %v3567_v63 }
 0x17d   : > { %3270 = vmatprep.subr.bf16.mxu0 %v3568_v47 }
 0x180   : > { %3271 = vmatpush3.bf16.msra.mxu0 %v3568_v47 }
 0x182   : > { %1711 = vmatmul.mubr.bf16.gmra.mrb[56].mxu1 %v4222_v24  ;;  %2090 = vmatmul.mubr.bf16.gmra.mrb[48].mxu0 %v4250_v51 }
 0x183   : > { %1718 = vmatprep.mubr.bf16.mxu1 %v4137_v28  ;;  %2097 = vmatprep.mubr.bf16.mxu0 %v4128_v25 }
 0x18a   : > { %1719 = vmatmul.mubr.bf16.gmra.mrb[60].mxu1 %v4250_v51  ;;  %2098 = vmatmul.mubr.bf16.gmra.mrb[52].mxu0 %v4272_v5 }
 0x18b   : > { %1726 = vmatprep.mubr.bf16.mxu1 %v4128_v25  ;;  %2105 = vmatprep.mubr.bf16.mxu0 %v4006_v38  ;;  %v3571_v38 = vld [vmem:[%s4645_s5 + $0x10] sm:$0xff]  }
 0x192   : > { %1727 = vmatmul.mubr.bf16.gmra.mrb[64].mxu1 %v4272_v5  ;;  %2106 = vmatmul.mubr.bf16.gmra.mrb[56].mxu0 %v4296_v13 }
 0x193   : > { %2861 = vmatprep.mubr.msk.bf16.mxu0 %vm2859_vm11, %v3998_v33  ;;  %v3570_v33 = vld [vmem:[%s4645_s5 + $0x8] sm:$0xff]  }
 0x194   : > { %3290 = vmatprep.subr.bf16.mxu1 %v3570_v33 }
 0x195   : > { %3291 = vmatpush3.bf16.msra.mxu1 %v3570_v33 }
 0x196   : > { %3292 = vmatprep.subr.bf16.mxu1 %v3571_v38 }
 0x199   : > { %3293 = vmatpush3.bf16.msra.mxu1 %v3571_v38 }
 0x19a   : > { %2114 = vmatmul.mubr.bf16.gmra.mrb[60].mxu0 %v1015_v7  ;;  %3294 = vmatprep.subr.bf16.mxu1 %v3572_v50 }
 0x19b   : > { %3272 = vmatprep.mubr.bf16.mxu0 %v4089_v48 }
 0x19d   : > { %3295 = vmatpush3.bf16.msra.mxu1 %v3572_v50 }
 0x19e   : > { %3296 = vmatprep.subr.bf16.mxu1 %v3573_v55 }
 0x1a1   : > { %3297 = vmatpush3.bf16.msra.mxu1 %v3573_v55 }
 0x1a2   : > { %3273 = vmatmul.mubr.bf16.vlgmr.msra.gmra.mrb[16].mxu0 %v4107_v60  ;;  %3298 = vmatprep.subr.bf16.mxu1 %v3574_v41 }
 0x1a3   : > { %3276 = vmatprep.mubr.bf16.mxu0 %v4141_v29 }
 0x1a5   : > { %3299 = vmatpush3.bf16.msra.mxu1 %v3574_v41 }
 0x1a6   : > { %3300 = vmatprep.subr.bf16.mxu1 %v3575_v26 }
 0x1a9   : > { %3301 = vmatpush3.bf16.msra.mxu1 %v3575_v26 }
 0x1aa   : > { %3277 = vmatmul.mubr.bf16.gmra.mrb[20].mxu0 %v4159_v43  ;;  %3302 = vmatprep.subr.bf16.mxu1 %v3576_v21 }
 0x1ab   : > { %3280 = vmatprep.mubr.bf16.mxu0 %v4186_v61 }
 0x1ad   : > { %3303 = vmatpush3.bf16.msra.mxu1 %v3576_v21 }
 0x1b2   : > { %3281 = vmatmul.mubr.bf16.gmra.mrb[24].mxu0 %v4201_v15 }
 0x1b3   : > { %3284 = vmatprep.mubr.bf16.mxu0 %v4226_v54 }
 0x1ba   : > { %3285 = vmatmul.mubr.bf16.gmra.mrb[28].mxu0 %v1058_v46 }
 0x1ec   : > { %v2916_v45 = vpop.f32.mrb[4].mxu1 }
 0x1ed   : > { %v2917_v48 = vpop.f32.mrb[5].mxu1 }
 0x1ee   : > { %v2918_v60 = vadd.f32 %v2917_v48, %v2916_v45  ;;  %v2919_v3 = vpop.f32.mrb[6].mxu1 }
 0x1ef   : > { %v2920_v7 = vpop.f32.mrb[7].mxu1 }
 0x1f0   : > { %v2921_v25 = vadd.f32 %v2920_v7, %v2919_v3 }
 0x1f5   : > { %v2922_v28 = vpop.f32.mrb[8].mxu1 }
 0x1f6   : > { %v2923_v29 = vpop.f32.mrb[9].mxu1 }
 0x1f7   : > { %v2924_v36 = vadd.f32 %v2923_v29, %v2922_v28  ;;  %v2925_v43 = vpop.f32.mrb[10].mxu1 }
 0x1f8   : > { %v2926_v46 = vpop.f32.mrb[11].mxu1 }
 0x1f9   : > { %v2927_v8 = vadd.f32 %v2926_v46, %v2925_v43 }
 0x1fd   : > { %v2928_v61 = vpop.f32.mrb[12].mxu1 }
 0x1fe   : > { %v2929_v15 = vpop.f32.mrb[13].mxu1 }
 0x1ff   : > { %v4416_v22 = vadd.f32 %v2929_v15, %v2928_v61  ;;  %v2931_v0 = vpop.f32.mrb[14].mxu1 }
 0x200   : > { %v2932_v18 = vpop.f32.mrb[15].mxu1 }
 0x201   : > { %v4418_v23 = vadd.f32 %v2932_v18, %v2931_v0 }
 0x205   : > { %v2934_v24 = vpop.f32.mrb[16].mxu1 }
 0x206   : > { %v2935_v54 = vpop.f32.mrb[17].mxu1 }
 0x207   : > { %v4420_v27 = vadd.f32 %v2935_v54, %v2934_v24  ;;  %v2937_v39 = vpop.f32.mrb[18].mxu1 }
 0x208   : > { %v2938_v57 = vpop.f32.mrb[19].mxu1 }
 0x209   : > { %v4422_v32 = vadd.f32 %v2938_v57, %v2937_v39 }
 0x20d   : > { %v2940_v34 = vpop.f32.mrb[20].mxu1 }
 0x20e   : > { %v2941_v42 = vpop.f32.mrb[21].mxu1 }
 0x20f   : > { %v4424_v16 = vadd.f32 %v2941_v42, %v2940_v34  ;;  %v2943_v49 = vpop.f32.mrb[22].mxu1 }
 0x210   : > { %v2944_v51 = vpop.f32.mrb[23].mxu1 }
 0x211   : > { %v4426_v53 = vadd.f32 %v2944_v51, %v2943_v49 }
 0x215   : > { %v2946_v37 = vpop.f32.mrb[24].mxu1 }
 0x216   : > { %v2947_v56 = vpop.f32.mrb[25].mxu1 }
 0x217   : > { %v4428_v58 = vadd.f32 %v2947_v56, %v2946_v37  ;;  %v2949_v4 = vpop.f32.mrb[26].mxu1 }
 0x218   : > { %v2950_v59 = vpop.f32.mrb[27].mxu1 }
 0x219   : > { %v4430_v5 = vadd.f32 %v2950_v59, %v2949_v4 }
 0x21d   : > { %v2952_v6 = vpop.f32.mrb[28].mxu1 }
 0x21e   : > { %v2953_v40 = vpop.f32.mrb[29].mxu1 }
 0x21f   : > { %v4432_v62 = vadd.f32 %v2953_v40, %v2952_v6  ;;  %v2955_v9 = vpop.f32.mrb[30].mxu1 }
 0x220   : > { %v2956_v10 = vpop.f32.mrb[31].mxu1 }
 0x221   : > { %v4434_v12 = vadd.f32 %v2956_v10, %v2955_v9 }
 0x225   : > { %v2958_v13 = vpop.f32.mrb[32].mxu1 }
 0x226   : > { %v2959_v14 = vpop.f32.mrb[33].mxu1 }
 0x227   : > { %v4436_v52 = vadd.f32 %v2959_v14, %v2958_v13  ;;  %v2961_v17 = vpop.f32.mrb[34].mxu1 }
 0x228   : > { %v2962_v35 = vpop.f32.mrb[35].mxu1 }
 0x229   : > { %v4438_v19 = vadd.f32 %v2962_v35, %v2961_v17 }
 0x22d   : > { %v2996_v20 = vpop.f32.mrb[36].mxu1 }
 0x22e   : > { %v2997_v30 = vpop.f32.mrb[37].mxu1 }
 0x22f   : > { %v2998_v31 = vadd.f32 %v2997_v30, %v2996_v20  ;;  %v2999_v44 = vpop.f32.mrb[38].mxu1 }
 0x230   : > { %v3000_v1 = vpop.f32.mrb[39].mxu1 }
 0x231   : > { %v3339_v2 = vadd.f32 %v2998_v31, %v2918_v60  ;;  %v3001_v63 = vadd.f32 %v3000_v1, %v2999_v44 }
 0x233   : > { %v3345_v47 = vadd.f32 %v3001_v63, %v2921_v25 }
 0x235   : > { %v3002_v11 = vpop.f32.mrb[40].mxu1  ;;  %v3076_v33 = vpop.f32.mrb[32].mxu0 }
 0x236   : > { %v3003_v38 = vpop.f32.mrb[41].mxu1  ;;  %v3077_v50 = vpop.f32.mrb[33].mxu0 }
 0x237   : > { %v3004_v55 = vadd.f32 %v3003_v38, %v3002_v11  ;;  %v3078_v41 = vadd.f32 %v3077_v50, %v3076_v33  ;;  %v3005_v45 = vpop.f32.mrb[42].mxu1  ;;  %v3079_v48 = vpop.f32.mrb[34].mxu0 }
 0x238   : > { %v3006_v3 = vpop.f32.mrb[43].mxu1  ;;  %v3080_v7 = vpop.f32.mrb[35].mxu0 }
 0x239   : > { %v3336_v26 = vadd.f32 %v3004_v55, %v2924_v36  ;;  %v3007_v28 = vadd.f32 %v3006_v3, %v3005_v45  ;;  %v3081_v29 = vadd.f32 %v3080_v7, %v3079_v48  ;;  %v4440_v43 = vadd.f32 %v3339_v2, %v3078_v41 }
 0x23b   : > { %v3342_v46 = vadd.f32 %v3007_v28, %v2927_v8  ;;  %v4442_v61 = vadd.f32 %v3345_v47, %v3081_v29 }
 0x23d   : > { %v3008_v60 = vpop.f32.mrb[44].mxu1  ;;  %v3082_v25 = vpop.f32.mrb[36].mxu0 }
 0x23e   : > { %v3009_v15 = vpop.f32.mrb[45].mxu1  ;;  %v3083_v21 = vpop.f32.mrb[37].mxu0 }
 0x23f   : > { %v3010_v0 = vadd.f32 %v3009_v15, %v3008_v60  ;;  %v3084_v18 = vadd.f32 %v3083_v21, %v3082_v25  ;;  %v3011_v24 = vpop.f32.mrb[46].mxu1  ;;  %v3085_v54 = vpop.f32.mrb[38].mxu0 }
 0x240   : > { %v3012_v39 = vpop.f32.mrb[47].mxu1  ;;  %v3086_v57 = vpop.f32.mrb[39].mxu0 }
 0x241   : > { %v3351_v34 = vadd.f32 %v3010_v0, %v4416_v22  ;;  %v3013_v36 = vadd.f32 %v3012_v39, %v3011_v24  ;;  %v3087_v42 = vadd.f32 %v3086_v57, %v3085_v54  ;;  %v4445_v49 = vadd.f32 %v3336_v26, %v3084_v18 }
 0x243   : > { %v3357_v8 = vadd.f32 %v3013_v36, %v4418_v23  ;;  %v4448_v51 = vadd.f32 %v3342_v46, %v3087_v42 }
 0x245   : > { %v3014_v37 = vpop.f32.mrb[48].mxu1  ;;  %v3088_v56 = vpop.f32.mrb[40].mxu0 }
 0x246   : > { %v3015_v4 = vpop.f32.mrb[49].mxu1  ;;  %v3089_v59 = vpop.f32.mrb[41].mxu0 }
 0x247   : > { %v3016_v6 = vadd.f32 %v3015_v4, %v3014_v37  ;;  %v3090_v40 = vadd.f32 %v3089_v59, %v3088_v56  ;;  %v3017_v9 = vpop.f32.mrb[50].mxu1  ;;  %v3091_v10 = vpop.f32.mrb[42].mxu0 }
 0x248   : > { %v3018_v13 = vpop.f32.mrb[51].mxu1  ;;  %v3092_v14 = vpop.f32.mrb[43].mxu0 }
 0x249   : > { %v3348_v22 = vadd.f32 %v3016_v6, %v4420_v27  ;;  %v3019_v17 = vadd.f32 %v3018_v13, %v3017_v9  ;;  %v3093_v35 = vadd.f32 %v3092_v14, %v3091_v10  ;;  %v4451_v20 = vadd.f32 %v3351_v34, %v3090_v40 }
 0x24b   : > { %v3354_v23 = vadd.f32 %v3019_v17, %v4422_v32  ;;  %v4454_v30 = vadd.f32 %v3357_v8, %v3093_v35 }
 0x24d   : > { %v3020_v31 = vpop.f32.mrb[52].mxu1  ;;  %v3094_v44 = vpop.f32.mrb[44].mxu0 }
 0x24e   : > { %v3021_v1 = vpop.f32.mrb[53].mxu1  ;;  %v3095_v2 = vpop.f32.mrb[45].mxu0 }
 0x24f   : > { %v3022_v63 = vadd.f32 %v3021_v1, %v3020_v31  ;;  %v3096_v47 = vadd.f32 %v3095_v2, %v3094_v44  ;;  %v3023_v11 = vpop.f32.mrb[54].mxu1  ;;  %v3097_v33 = vpop.f32.mrb[46].mxu0 }
 0x250   : > { %v3024_v38 = vpop.f32.mrb[55].mxu1  ;;  %v3098_v50 = vpop.f32.mrb[47].mxu0 }
 0x251   : > { %v3363_v27 = vadd.f32 %v3022_v63, %v4424_v16  ;;  %v3025_v55 = vadd.f32 %v3024_v38, %v3023_v11  ;;  %v3099_v41 = vadd.f32 %v3098_v50, %v3097_v33  ;;  %v4457_v45 = vadd.f32 %v3348_v22, %v3096_v47 }
 0x253   : > { %v3369_v32 = vadd.f32 %v3025_v55, %v4426_v53  ;;  %v4460_v48 = vadd.f32 %v3354_v23, %v3099_v41 }
 0x255   : > { %v3026_v3 = vpop.f32.mrb[56].mxu1  ;;  %v3100_v7 = vpop.f32.mrb[48].mxu0 }
 0x256   : > { %v3027_v26 = vpop.f32.mrb[57].mxu1  ;;  %v3101_v28 = vpop.f32.mrb[49].mxu0 }
 0x257   : > { %v3028_v29 = vadd.f32 %v3027_v26, %v3026_v3  ;;  %v3102_v46 = vadd.f32 %v3101_v28, %v3100_v7  ;;  %v3029_v60 = vpop.f32.mrb[58].mxu1  ;;  %v3103_v25 = vpop.f32.mrb[50].mxu0 }
 0x258   : > { %v3030_v15 = vpop.f32.mrb[59].mxu1  ;;  %v3104_v21 = vpop.f32.mrb[51].mxu0 }
 0x259   : > { %v3360_v16 = vadd.f32 %v3028_v29, %v4428_v58  ;;  %v3031_v0 = vadd.f32 %v3030_v15, %v3029_v60  ;;  %v3105_v18 = vadd.f32 %v3104_v21, %v3103_v25  ;;  %v4463_v24 = vadd.f32 %v3363_v27, %v3102_v46 }
 0x25b   : > { %v3366_v53 = vadd.f32 %v3031_v0, %v4430_v5  ;;  %v4466_v54 = vadd.f32 %v3369_v32, %v3105_v18 }
 0x25d   : > { %v3032_v39 = vpop.f32.mrb[60].mxu1  ;;  %v3106_v57 = vpop.f32.mrb[52].mxu0 }
 0x25e   : > { %v3033_v34 = vpop.f32.mrb[61].mxu1  ;;  %v3107_v36 = vpop.f32.mrb[53].mxu0 }
 0x25f   : > { %v3034_v42 = vadd.f32 %v3033_v34, %v3032_v39  ;;  %v3108_v8 = vadd.f32 %v3107_v36, %v3106_v57  ;;  %v3035_v37 = vpop.f32.mrb[62].mxu1  ;;  %v3109_v56 = vpop.f32.mrb[54].mxu0 }
 0x260   : > { %v3036_v4 = vpop.f32.mrb[63].mxu1  ;;  %v3110_v59 = vpop.f32.mrb[55].mxu0 }
 0x261   : > { %v3375_v58 = vadd.f32 %v3034_v42, %v4432_v62  ;;  %v3037_v6 = vadd.f32 %v3036_v4, %v3035_v37  ;;  %v3111_v40 = vadd.f32 %v3110_v59, %v3109_v56  ;;  %v4469_v9 = vadd.f32 %v3360_v16, %v3108_v8 }
 0x263   : > { %v3381_v5 = vadd.f32 %v3037_v6, %v4434_v12  ;;  %v4472_v10 = vadd.f32 %v3366_v53, %v3111_v40 }
 0x265   : > { %v3038_v13 = vpop.f32.mrb[64].mxu1  ;;  %v3112_v14 = vpop.f32.mrb[56].mxu0 }
 0x266   : > { %v3039_v22 = vpop.f32.mrb[65].mxu1  ;;  %v3113_v17 = vpop.f32.mrb[57].mxu0 }
 0x267   : > { %v3040_v35 = vadd.f32 %v3039_v22, %v3038_v13  ;;  %v3114_v23 = vadd.f32 %v3113_v17, %v3112_v14  ;;  %v3041_v31 = vpop.f32.mrb[66].mxu1  ;;  %v3115_v44 = vpop.f32.mrb[58].mxu0 }
 0x268   : > { %v3042_v1 = vpop.f32.mrb[67].mxu1  ;;  %v3116_v2 = vpop.f32.mrb[59].mxu0 }
 0x269   : > { %v3372_v62 = vadd.f32 %v3040_v35, %v4436_v52  ;;  %v3043_v63 = vadd.f32 %v3042_v1, %v3041_v31  ;;  %v3117_v47 = vadd.f32 %v3116_v2, %v3115_v44  ;;  %v4475_v11 = vadd.f32 %v3375_v58, %v3114_v23  ;;  %v4485_v52 = vld [vmem:[%s4647_s7] ss:$0 sm:$0xff] }
 0x26b   : > { %v3378_v12 = vadd.f32 %v3043_v63, %v4438_v19  ;;  %v4478_v33 = vadd.f32 %v3381_v5, %v3117_v47 }
 0x26d   : > { %v3118_v38 = vpop.f32.mrb[60].mxu0 }
 0x26e   : > { %v3119_v50 = vpop.f32.mrb[61].mxu0 }
 0x26f   : > { %v3120_v27 = vadd.f32 %v3119_v50, %v3118_v38  ;;  %v3121_v55 = vpop.f32.mrb[62].mxu0 }
 0x270   : > { %v3122_v41 = vpop.f32.mrb[63].mxu0 }
 0x271   : > { %v3123_v32 = vadd.f32 %v3122_v41, %v3121_v55  ;;  %v3373_v3 = vadd.f32 %v3372_v62, %v3120_v27 }
 0x273   : > { %v4480_v7 = vadd.f32 %v3378_v12, %v3123_v32 }
 0x275   : > { %v3274_v26 = vpop.f32.mrb[16].mxu0 }
 0x276   : > { %v3338_v28 = vadd.f32 %v4445_v49, %v3274_v26  ;;  %v2156_v19 = vpop.f32.mrb[17].mxu0 }
 0x277   : > { %v3341_v29 = vadd.f32 %v4440_v43, %v2156_v19  ;;  %v3275_v46 = vpop.f32.mrb[18].mxu0 }
 0x278   : > { %v2244_v60 = vadd.f32 %v3338_v28, %v4485_v52  ;;  %v3344_v25 = vadd.f32 %v4448_v51, %v3275_v46  ;;  %v2159_v15 = vpop.f32.mrb[19].mxu0 }
 0x279   : > { %v2242_v21 = vadd.f32 %v3341_v29, %v4485_v52  ;;  %v3347_v16 = vadd.f32 %v4442_v61, %v2159_v15 }
 0x27a   : > { %v2245_v0 = vadd.f32 %v3344_v25, %v4485_v52  ;;  %v2260_v53 = vmax.f32 %v2244_v60, 0.0 }
 0x27b   : > { %v2243_v18 = vadd.f32 %v3347_v16, %v4485_v52  ;;  %v2258_v49 = vmax.f32 %v2242_v21, 0.0 }
 0x27c   : > { %v2261_v39 = vmax.f32 %v2245_v0, 0.0 }
 0x27d   : > { %v2259_v57 = vmax.f32 %v2243_v18, 0.0  ;;  %v3278_v34 = vpop.f32.mrb[20].mxu0 }
 0x27e   : > { %v2275_v43 = vpack.c.bf16 %v2261_v39, %v2260_v53  ;;  %v3350_v36 = vadd.f32 %v4457_v45, %v3278_v34  ;;  %v2172_v42 = vpop.f32.mrb[21].mxu0 }
 0x27f   : > { %v3353_v51 = vadd.f32 %v4451_v20, %v2172_v42  ;;  %v3279_v8 = vpop.f32.mrb[22].mxu0  ;;  %v2274_v37 = vpack.c.bf16 %v2259_v57, %v2258_v49  ;;  %v3577_v49 = vld [vmem:[%s3861_s25 + $0x10] sm:$0xff] }
 0x280   : > { %v2248_v56 = vadd.f32 %v3350_v36, %v4485_v52  ;;  %v3356_v61 = vadd.f32 %v4460_v48, %v3279_v8  ;;  %v2175_v4 = vpop.f32.mrb[23].mxu0  ;;  %v3578_v36 = vld [vmem:[%s3861_s25] sm:$0xff] }
 0x281   : > { %v2246_v59 = vadd.f32 %v3353_v51, %v4485_v52  ;;  %v3359_v58 = vadd.f32 %v4454_v30, %v2175_v4  ;;  %3304 = vmatprep.mubr.bf16.mxu1 %v2274_v37  ;;  %v3579_v37 = vld [vmem:[%s3861_s25 + $0x18] sm:$0xff]  ;;  %v3580_v4 = vld [vmem:[%s3861_s25 + $0x8] sm:$0xff] }
 0x282   : > { %v2249_v6 = vadd.f32 %v3356_v61, %v4485_v52  ;;  %3305 = vmatmul.mubr.bf16.vlgmr.msra.gmra.mrb[68].mxu1 %v2275_v43  ;;  %v2264_v40 = vmax.f32 %v2248_v56, 0.0 }
 0x283   : > { %v2247_v45 = vadd.f32 %v3359_v58, %v4485_v52  ;;  %v2262_v20 = vmax.f32 %v2246_v59, 0.0 }
 0x284   : > { %v2265_v5 = vmax.f32 %v2249_v6, 0.0 }
 0x285   : > { %v2263_v13 = vmax.f32 %v2247_v45, 0.0  ;;  %v3282_v14 = vpop.f32.mrb[24].mxu0 }
 0x286   : > { %v3362_v22 = vadd.f32 %v4469_v9, %v3282_v14  ;;  %v2188_v17 = vpop.f32.mrb[25].mxu0  ;;  %v2277_v48 = vpack.c.bf16 %v2265_v5, %v2264_v40  ;;  %v3581_v14 = vld [vmem:[%s3861_s25 + $0x30] sm:$0xff] }
 0x287   : > { %v3365_v35 = vadd.f32 %v4463_v24, %v2188_v17  ;;  %v3283_v23 = vpop.f32.mrb[26].mxu0  ;;  %v2276_v31 = vpack.c.bf16 %v2263_v13, %v2262_v20 }
 0x288   : > { %v2252_v30 = vadd.f32 %v3362_v22, %v4485_v52  ;;  %v3368_v44 = vadd.f32 %v4472_v10, %v3283_v23  ;;  %v2191_v1 = vpop.f32.mrb[27].mxu0 }
 0x289   : > { %v2250_v2 = vadd.f32 %v3365_v35, %v4485_v52  ;;  %v3371_v62 = vadd.f32 %v4466_v54, %v2191_v1  ;;  %3308 = vmatprep.mubr.bf16.mxu1 %v2276_v31  ;;  %v3582_v35 = vld [vmem:[%s3861_s25 + $0x20] sm:$0xff] }
 0x28a   : > { %v2253_v63 = vadd.f32 %v3368_v44, %v4485_v52  ;;  %3309 = vmatmul.mubr.bf16.gmra.mrb[72].mxu1 %v2277_v48  ;;  %v2268_v47 = vmax.f32 %v2252_v30, 0.0  ;;  %v3583_v44 = vld [vmem:[%s3861_s25 + $0x38] sm:$0xff] }
 0x28b   : > { %v2251_v9 = vadd.f32 %v3371_v62, %v4485_v52  ;;  %v2266_v24 = vmax.f32 %v2250_v2, 0.0  ;;  %v3584_v62 = vld [vmem:[%s3861_s25 + $0x28] sm:$0xff] }
 0x28c   : > { %v2269_v12 = vmax.f32 %v2253_v63, 0.0 }
 0x28d   : > { %v2267_v38 = vmax.f32 %v2251_v9, 0.0  ;;  %v3286_v50 = vpop.f32.mrb[28].mxu0 }
 0x28e   : > { %v3374_v27 = vadd.f32 %v3373_v3, %v3286_v50  ;;  %v2204_v55 = vpop.f32.mrb[29].mxu0  ;;  %v2279_v41 = vpack.c.bf16 %v2269_v12, %v2268_v47 }
 0x28f   : > { %v3377_v10 = vadd.f32 %v4475_v11, %v2204_v55  ;;  %v3287_v32 = vpop.f32.mrb[30].mxu0  ;;  %v2278_v26 = vpack.c.bf16 %v2267_v38, %v2266_v24  ;;  %v3585_v55 = vld [vmem:[%s3861_s25 + $0x50] sm:$0xff] }
 0x290   : > { %v2256_v54 = vadd.f32 %v3374_v27, %v4485_v52  ;;  %v3380_v28 = vadd.f32 %v4480_v7, %v3287_v32  ;;  %v2207_v19 = vpop.f32.mrb[31].mxu0 }
 0x291   : > { %v2254_v29 = vadd.f32 %v3377_v10, %v4485_v52  ;;  %v3383_v46 = vadd.f32 %v4478_v33, %v2207_v19  ;;  %3312 = vmatprep.mubr.bf16.mxu1 %v2278_v26  ;;  %v4522_v33 = vld [vmem:[%s4648_s8] ss:$0 sm:$0xff] }
 0x292   : > { %v2257_v3 = vadd.f32 %v3380_v28, %v4485_v52  ;;  %3313 = vmatmul.mubr.bf16.gmra.mrb[76].mxu1 %v2279_v41  ;;  %v2272_v11 = vmax.f32 %v2256_v54, 0.0  ;;  %v3586_v26 = vld [vmem:[%s3861_s25 + $0x40] sm:$0xff] }
 0x293   : > { %v2255_v60 = vadd.f32 %v3383_v46, %v4485_v52  ;;  %v2270_v15 = vmax.f32 %v2254_v29, 0.0  ;;  %v3587_v29 = vld [vmem:[%s3861_s25 + $0x58] sm:$0xff] }
 0x294   : > { %v2273_v25 = vmax.f32 %v2257_v3, 0.0 }
 0x295   : > { %v2271_v21 = vmax.f32 %v2255_v60, 0.0  ;;  %v3588_v60 = vld [vmem:[%s3861_s25 + $0x48] sm:$0xff] }
 0x296   : > { %v2281_v16 = vpack.c.bf16 %v2273_v25, %v2272_v11 }
 0x297   : > { %v2280_v7 = vpack.c.bf16 %v2271_v21, %v2270_v15 }
 0x299   : > { %3316 = vmatprep.mubr.bf16.mxu1 %v2280_v7 }
 0x29a   : > { %3317 = vmatmul.mubr.bf16.gmra.mrb[80].mxu1 %v2281_v16 }
 0x355   : > { %v3306_v0 = vpop.f32.mrb[68].mxu1 }
 0x356   : > { %v2396_v52 = vadd.f32 %v3306_v0, %v4522_v33  ;;  %v2387_v18 = vpop.f32.mrb[69].mxu1 }
 0x357   : > { %v2388_v53 = vadd.f32 %v4522_v33, %v2387_v18  ;;  %v3307_v39 = vpop.f32.mrb[70].mxu1  ;;  %v3589_v18 = vld [vmem:[%s3861_s25 + $0x70] sm:$0xff] }
 0x358   : > { %v2452_v57 = vadd.f32 %v3577_v49, %v2396_v52  ;;  %v2399_v34 = vadd.f32 %v3307_v39, %v4522_v33  ;;  %v2390_v43 = vpop.f32.mrb[71].mxu1 }
 0x359   : > { %v2450_v42 = vadd.f32 %v3578_v36, %v2388_v53  ;;  %v2391_v51 = vadd.f32 %v4522_v33, %v2390_v43 }
 0x35a   : > { %v2468_v8 = vmax.f32 %v2452_v57, 0.0  ;;  %v2453_v56 = vadd.f32 %v3579_v37, %v2399_v34  ;;  %v3590_v57 = vld [vmem:[%s3861_s25 + $0x60] sm:$0xff]  ;;  %v3592_v37 = vld [vmem:[%s3861_s25 + $0x68] sm:$0xff] }
 0x35b   : > { %v2466_v61 = vmax.f32 %v2450_v42, 0.0  ;;  %v2451_v59 = vadd.f32 %v3580_v4, %v2391_v51  ;;  %v3591_v42 = vld [vmem:[%s3861_s25 + $0x78] sm:$0xff]  ;;  %s3593_s25 = scalar_lea.vmem %s4581_s13, 2048 }
 0x35c   : > { %2484 = vst [vmem:[%s4534_s18 + $0x10] sm:$0xff] %v2468_v8  ;;  %v2469_v58 = vmax.f32 %v2453_v56, 0.0  ;;  %p3594_p6 = scmp.ne.s32.totalorder %s4581_s13, %s3593_s25  ;;  %p3601_p11 = scmp.lt.s32.totalorder %s3599_s24, %s3593_s25 }
 0x35d   : > { %2482 = vst [vmem:[%s4534_s18] sm:$0xff] %v2466_v61  ;;  %v2467_v6 = vmax.f32 %v2451_v59, 0.0  ;;  %v3310_v45 = vpop.f32.mrb[72].mxu1 }
 0x35e   : > { %2485 = vst [vmem:[%s4534_s18 + $0x18] sm:$0xff] %v2469_v58  ;;  %v2412_v40 = vadd.f32 %v3310_v45, %v4522_v33  ;;  %v2403_v5 = vpop.f32.mrb[73].mxu1  ;;  %p3595_p7 = pnand %p3594_p6, %p3793_p3  ;;  %p3602_p12 = por %p3601_p11, %p3600_p10 }
 0x35f   : > { %2483 = vst [vmem:[%s4534_s18 + $0x8] sm:$0xff] %v2467_v6  ;;  %v2404_v20 = vadd.f32 %v4522_v33, %v2403_v5  ;;  %v3311_v13 = vpop.f32.mrb[74].mxu1 }
 0x360   : > { %v2456_v22 = vadd.f32 %v3581_v14, %v2412_v40  ;;  %v2415_v17 = vadd.f32 %v3311_v13, %v4522_v33  ;;  %v2406_v48 = vpop.f32.mrb[75].mxu1  ;;  %p3596_p9 = pneg %p3595_p7 }
 0x361   : > { %v2454_v23 = vadd.f32 %v3582_v35, %v2404_v20  ;;  %v2407_v31 = vadd.f32 %v4522_v33, %v2406_v48 }
 0x362   : > { %v2472_v30 = vmax.f32 %v2456_v22, 0.0  ;;  %v2457_v1 = vadd.f32 %v3583_v44, %v2415_v17  ;;  %p3603_p13 = pnand %p3602_p12, %p3596_p9 }
 0x363   : > { %v2470_v2 = vmax.f32 %v2454_v23, 0.0  ;;  %v2455_v63 = vadd.f32 %v3584_v62, %v2407_v31 }
 0x364   : > { %2488 = vst [vmem:[%s4534_s18 + $0x30] sm:$0xff] %v2472_v30  ;;  %v2473_v9 = vmax.f32 %v2457_v1, 0.0 }
 0x365   : > { %2486 = vst [vmem:[%s4534_s18 + $0x20] sm:$0xff] %v2470_v2  ;;  %v2471_v47 = vmax.f32 %v2455_v63, 0.0  ;;  %v3314_v12 = vpop.f32.mrb[76].mxu1 }
 0x366   : > { %2489 = vst [vmem:[%s4534_s18 + $0x38] sm:$0xff] %v2473_v9  ;;  %v2428_v24 = vadd.f32 %v3314_v12, %v4522_v33  ;;  %v2419_v38 = vpop.f32.mrb[77].mxu1 }
 0x367   : > { %2487 = vst [vmem:[%s4534_s18 + $0x28] sm:$0xff] %v2471_v47  ;;  %v2420_v50 = vadd.f32 %v4522_v33, %v2419_v38  ;;  %v3315_v27 = vpop.f32.mrb[78].mxu1 }
 0x368   : > { %v2460_v41 = vadd.f32 %v3585_v55, %v2428_v24  ;;  %v2431_v10 = vadd.f32 %v3315_v27, %v4522_v33  ;;  %v2422_v32 = vpop.f32.mrb[79].mxu1 }
 0x369   : > { %v2458_v54 = vadd.f32 %v3586_v26, %v2420_v50  ;;  %v2423_v28 = vadd.f32 %v4522_v33, %v2422_v32 }
 0x36a   : > { %v2476_v19 = vmax.f32 %v2460_v41, 0.0  ;;  %v2461_v46 = vadd.f32 %v3587_v29, %v2431_v10 }
 0x36b   : > { %v2474_v3 = vmax.f32 %v2458_v54, 0.0  ;;  %v2459_v11 = vadd.f32 %v3588_v60, %v2423_v28 }
 0x36c   : > { %2492 = vst [vmem:[%s4534_s18 + $0x50] sm:$0xff] %v2476_v19  ;;  %v2477_v25 = vmax.f32 %v2461_v46, 0.0 }
 0x36d   : > { %2490 = vst [vmem:[%s4534_s18 + $0x40] sm:$0xff] %v2474_v3  ;;  %v2475_v15 = vmax.f32 %v2459_v11, 0.0  ;;  %v3318_v21 = vpop.f32.mrb[80].mxu1 }
 0x36e   : > { %2493 = vst [vmem:[%s4534_s18 + $0x58] sm:$0xff] %v2477_v25  ;;  %v2444_v16 = vadd.f32 %v3318_v21, %v4522_v33  ;;  %v2435_v7 = vpop.f32.mrb[81].mxu1 }
 0x36f   : > { %2491 = vst [vmem:[%s4534_s18 + $0x48] sm:$0xff] %v2475_v15  ;;  %v2436_v0 = vadd.f32 %v4522_v33, %v2435_v7  ;;  %v3319_v52 = vpop.f32.mrb[82].mxu1 }
 0x370   : > { %v2464_v53 = vadd.f32 %v3589_v18, %v2444_v16  ;;  %v2447_v39 = vadd.f32 %v3319_v52, %v4522_v33  ;;  %v2438_v49 = vpop.f32.mrb[83].mxu1 }
 0x371   : > { %v2462_v34 = vadd.f32 %v3590_v57, %v2436_v0  ;;  %v2439_v43 = vadd.f32 %v4522_v33, %v2438_v49 }
 0x372   : > { %v2480_v36 = vmax.f32 %v2464_v53, 0.0  ;;  %v2465_v51 = vadd.f32 %v3591_v42, %v2447_v39 }
 0x373   : > { %v2478_v8 = vmax.f32 %v2462_v34, 0.0  ;;  %v2463_v56 = vadd.f32 %v3592_v37, %v2439_v43 }
 0x374   : > { %2496 = vst [vmem:[%s4534_s18 + $0x70] sm:$0xff] %v2480_v36  ;;  %v2481_v61 = vmax.f32 %v2465_v51, 0.0 }
 0x375   : > { %2494 = vst [vmem:[%s4534_s18 + $0x60] sm:$0xff] %v2478_v8  ;;  %v2479_v33 = vmax.f32 %v2463_v56, 0.0 }
 0x376   : > { %2497 = vst [vmem:[%s4534_s18 + $0x78] sm:$0xff] %v2481_v61 }
 0x377   : > { %2495 = vst [vmem:[%s4534_s18 + $0x68] sm:$0xff] %v2479_v33 }
 0x378   : > { %3606 = shalt.err (!%p3603_p13)
}
 0x379   : > { %s3607_s14 = scalar_lea.hbm %s4579_s0, 2048  ;;  %s3611_s17 = scalar_lea.hbm %s4649_s9, 8192 }
 0x37a   : > { %p3608_p0 = scmp.ne.s32.totalorder %s4579_s0, %s3607_s14  ;;  %p3612_p4 = scmp.lt.u32.totalorder %s4579_s0, %s4649_s9 }
 0x37b   : > { %p3613_p5 = scmp.lt.u32.totalorder %s3611_s17, %s3607_s14  ;;  %p3615_p7 = scmp.lt.u32.totalorder %s3607_s14, %s4579_s0 }
 0x37c   : > { %p3609_p1 = pnand %p3608_p0, %p3793_p3 }
 0x37d   : > { %p3614_p6 = por %p3613_p5, %p3612_p4 }
 0x37e   : > { %p3610_p2 = pneg %p3609_p1 }
 0x37f   : > { %p3616_p9 = por %p3615_p7, %p3614_p6 }
 0x381   : > { %p3617_p10 = pnand %p3616_p9, %p3610_p2 }
 0x383   : > { %3620 = shalt.err (!%p3617_p10)
}
 0x384   : > { %s3690_s21 = smov 128   ;;  %s3691_s28 = smov 8  }
 0x385   : > { %3416 = dma.vmem_to_hbm [thread:$0]  (%p3793_p3), %s4581_s13, 2048, %s4579_s0, %s4588_s20, %s3690_s21, %s3690_s21, %s3691_s28  }
 0x386 PF: > { %p3422_p11 = scmp.ge.s32.totalorder %s3687_s16, 2  ;;  %s2530_s25 = sand.u32 1, %s3659_s30  }
 0x387   : > { %s2531_s29 = scalar_lea.sflag [#allocation3], %s2530_s25 }
 0x388   : > { %p3419_p12 = pnand %p3422_p11, %p3802_p8 }
 0x38a   : > { %3654 = dma.done.wait (!%p3419_p12), %s2531_s29, 2048  }
 0x38b   : > { %3656 = vsyncadd (!%p3419_p12), %s2531_s29, 4294965248  ;;  %s22_s16 = sadd.s32 1, %s3687_s16   ;;  %s4671_s12 = sld [smem:[#allocation5_spill]] }
 0x38c   : > { %p19_p13 = scmp.ge.s32.totalorder %s22_s16, 6   ;;  %s4672_s13 = sld [smem:[#allocation6_spill]] }
 0x38d   : > { %s4673_s14 = sld [smem:[#allocation7_spill]]  ;;  %s4674_s15 = sld [smem:[#allocation8_spill]] }
 0x38e   : > { %s4675_s30 = smov %s3663_s10  ;;  %s4676_s10 = smov %s3667_s11 }
 0x38f   : > { %s4677_s11 = smov %s3811_s27  ;;  %21 = sbr.rel (!%p19_p13) target bundleno = 7 (0x7), region = 99 }
 0x396   :  { %2536 = vsyncpa [#allocation3], 1 }
 0x397   :  { %2538 = vsyncpa [#allocation3 + $0x1], 1 }

</bundles_post_ra>
